<compile_context>
chip_gen: v6e
topology: v6e:2x2x1
jax: 0.10.0
libtpu: 0.0.40
codegen_flags: <defaults>
</compile_context>

<pallas_src>
import jax
import jax.numpy as jnp
import numpy as np
from jax.experimental import pallas as pl
from jax.experimental.pallas import tpu as pltpu


# ----------------------------------------------------------------------------
# Kernel helpers (traced inside the kernel body).
# ----------------------------------------------------------------------------
def _softmax_positions(logits):
    """Softmax over axis=1 (context positions); columns independent. f32 in/out."""
    m = jnp.max(logits, axis=1, keepdims=True)
    e = jnp.exp(logits - m)
    s = jnp.sum(e, axis=1, keepdims=True)
    return e * pl.reciprocal(s, approx=True)          # divide on the EUP slot


def _lam_from_pv(p, v):
    """lam[b,k,e] = sum_m p[b,m,k] * v[b,m,e]  — VPU mul + sublane reduce, no MXU.

    p: (TB, M, K) softmaxed keys, v: (TB, M, E) values -> (TB, K, E).
    """
    K = p.shape[2]
    rows = [jnp.sum(p[:, :, k:k + 1] * v, axis=1, keepdims=True)   # (TB, 1, E)
            for k in range(K)]
    return jnp.concatenate(rows, axis=1)                            # (TB, K, E)


def _apply_lam(q, lam, bias):
    """out[b,n,e] = bias[e] + sum_k q[b,n,k] * lam[b,k,e]  — VPU, unrolled over K.

    q: (TB, N, K), lam: (TB, K, E), bias: (1, E) -> (TB, N, E).
    """
    K = q.shape[2]
    acc = bias + q[:, :, 0:1] * lam[:, 0:1, :]
    for k in range(1, K):
        acc = acc + q[:, :, k:k + 1] * lam[:, k:k + 1, :]
    return acc


def _make_kernel(self_context):
    def kernel(*refs):
        if self_context:
            feat_ref, w1_ref, b_f_ref, w_i_ref, b_i_ref, out_ref = refs
        else:
            (feat_ref, ctx_ref, wq_ref, wkv_ref, b_f_ref, w_i_ref, b_i_ref,
             out_ref) = refs

        TB, N, E = feat_ref.shape
        x2 = feat_ref[...].reshape(TB * N, E)          # bf16; layout no-op when N % 8 == 0

        # ---- stage 1: gate + fieldFeature projections (big MXU matmuls, bf16 in, f32 acc)
        if self_context:
            # c == x  ->  single fused projection: [q_f|q_g | v_f | k_f|k_g | v_g]
            M = N
            K = (w1_ref.shape[1] - E - 1) // 4
            all1 = jnp.dot(x2, w1_ref[...],
                           preferred_element_type=jnp.float32)          # (TB*N, E+4K+1)
            all1 = all1.reshape(TB, N, E + 4 * K + 1)
            q_f = all1[:, :, :K]
            q_g = all1[:, :, K:2 * K]
            v_f = all1[:, :, 2 * K:2 * K + E]
            kfg = all1[:, :, 2 * K + E:2 * K + E + 2 * K]
            v_g = all1[:, :, 2 * K + E + 2 * K:]                          # (TB, N, 1)
        else:
            M = ctx_ref.shape[1]
            K = wq_ref.shape[1] // 2
            c2 = ctx_ref[...].reshape(TB * M, E)
            q_all = jnp.dot(x2, wq_ref[...], preferred_element_type=jnp.float32)
            kv_all = jnp.dot(c2, wkv_ref[...], preferred_element_type=jnp.float32)
            q_all = q_all.reshape(TB, N, 2 * K)
            kv_all = kv_all.reshape(TB, M, E + 2 * K + 1)
            q_f = q_all[:, :, :K]
            q_g = q_all[:, :, K:]
            v_f = kv_all[:, :, :E]
            kfg = kv_all[:, :, E:E + 2 * K]
            v_g = kv_all[:, :, E + 2 * K:]                                # (TB, M, 1)

        # one softmax over the contiguous [k_f | k_g] block (per-column over positions)
        p_fg = _softmax_positions(kfg)
        p_f = p_fg[:, :, :K]
        p_g = p_fg[:, :, K:]

        # fieldFeature lambda — VPU path
        lam_f = _lam_from_pv(p_f, v_f)                                     # (TB, K, E)
        field = _apply_lam(q_f, lam_f, b_f_ref[...])                       # (TB, N, E)

        # gate lambda (outDim == 1) — VPU/XLU broadcast-mul + reduce
        lam_g = jnp.sum(p_g * v_g, axis=1)                                 # (TB, K)
        gate_logit = jnp.sum(q_g * lam_g[:, None, :], axis=-1, keepdims=True)
        filt = field * jax.nn.sigmoid(gate_logit)                          # (TB, N, E) f32

        # ---- stage 2: interaction on (filter, filter): one fused projection ----
        f2 = filt.reshape(TB * N, E).astype(w_i_ref.dtype)                 # bf16 for MXU
        proj = jnp.dot(f2, w_i_ref[...], preferred_element_type=jnp.float32)
        proj = proj.reshape(TB, N, E + 2 * K)
        v_i = proj[:, :, :E]
        q_i = proj[:, :, E:E + K]
        k_i = proj[:, :, E + K:]

        p_i = _softmax_positions(k_i)
        lam_i = _lam_from_pv(p_i, v_i)                                     # (TB, K, E)
        out = _apply_lam(q_i, lam_i, b_i_ref[...])                         # (TB, N, E)
        out_ref[...] = out.astype(out_ref.dtype)

    return kernel


# ----------------------------------------------------------------------------
# Host-side helpers.
# ----------------------------------------------------------------------------
def _head_mean(wq, head_num):
    e, hk = wq.shape
    k = hk // head_num
    # mean_h(Q_h @ lam) == (x @ mean_h Wq_h) @ lam — exact fold of the head average.
    return wq.reshape(e, head_num, k).mean(axis=1)


def _num_tensorcores():
    """2 on megacore chips (v4 / v5p / v7x, where 2 TCs back one JAX device), else 1."""
    try:
        kind = jax.devices()[0].device_kind.lower()
    except Exception:
        return 1
    return 2 if any(t in kind for t in ("v4", "v5p", "v7", "7x")) else 1


def _pick_batch_block(batch, n, m, e, k, *, num_tc, budget_bytes):
    """Largest TB fitting a conservative VMEM byte budget (over-counted on purpose)."""
    per_b = (
        2 * n * e * 2            # feature slab, bf16, double-buffered
        + 2 * m * e * 2          # context slab, bf16, double-buffered
        + 2 * n * e * 4          # output slab, f32, double-buffered
        + 4 * (n * (e + 4 * k + 1)          # stage-1 fused projection (self-ctx worst case)
               + m * (e + 4 * k + 1)        # kv projection + softmax copy
               + 2 * k * e                  # lam_f, lam_i
               + 4 * n * e                  # field, filt, v_i, out
               + n * (e + 3 * k))           # stage-2 projection q/k slices
    )
    tb = max(1, budget_bytes // max(1, per_b))
    tb = min(tb, batch)
    # Only split for multiple TensorCores when the batch is big enough that it helps.
    if num_tc > 1 and batch >= 16 * num_tc:
        tb = min(tb, max(1, -(-batch // num_tc)))
    if tb >= 8:
        tb -= tb % 8             # keep TB*N rows sublane-aligned
    return int(max(tb, 1))


def lambda_interaction_forward(feature, params, field_weight=None, *, head_num,
                               mxu_dtype=jnp.bfloat16,
                               vmem_budget_bytes=20 * 1024 * 1024):
    """Pallas forward for LambdaInteractionLayerV3."""
    B, N, E = feature.shape
    self_context = field_weight is None
    M = N if self_context else field_weight.shape[1]
    K = params["wk_f"].shape[1]

    # --- exact weight preprocessing: fold head-mean into wq, fuse projections ---
    wq_gf = jnp.concatenate(
        [_head_mean(params["wq_f"], head_num),
         _head_mean(params["wq_g"], head_num)], axis=1)                       # (E, 2K)
    wkv_gf = jnp.concatenate(
        [params["wv_f"], params["wk_f"], params["wk_g"], params["wv_g"]],
        axis=1)                                                               # (E, E+2K+1)
    w_i = jnp.concatenate(
        [params["wv_i"], _head_mean(params["wq_i"], head_num), params["wk_i"]],
        axis=1).astype(mxu_dtype)                                             # (E, E+2K)
    b_f = params["b_f"].astype(jnp.float32)
    b_i = params["b_i"].astype(jnp.float32)

    num_tc = _num_tensorcores()
    tb = _pick_batch_block(B, N, M, E, K, num_tc=num_tc,
                           budget_bytes=vmem_budget_bytes)
    grid_b = (B + tb - 1) // tb
    Bp = grid_b * tb

    feat = feature.astype(mxu_dtype)
    if Bp != B:  # pad the batch with zeros instead of letting TB collapse
        feat = jnp.concatenate(
            [feat, jnp.zeros((Bp - B, N, E), feat.dtype)], axis=0)

    feat_spec = pl.BlockSpec((tb, N, E), lambda b: (b, 0, 0))
    out_spec = pl.BlockSpec((tb, N, E), lambda b: (b, 0, 0))

    if self_context:
        w1 = jnp.concatenate([wq_gf, wkv_gf], axis=1).astype(mxu_dtype)      # (E, E+4K+1)
        weight_args = [w1, b_f, w_i, b_i]
        in_specs = [feat_spec] + [pl.BlockSpec(w.shape, lambda b: (0, 0))
                                  for w in weight_args]
        args = (feat, *weight_args)
    else:
        ctx = field_weight.astype(mxu_dtype)
        if Bp != B:
            ctx = jnp.concatenate(
                [ctx, jnp.zeros((Bp - B, M, E), ctx.dtype)], axis=0)
        ctx_spec = pl.BlockSpec((tb, M, E), lambda b: (b, 0, 0))
        weight_args = [wq_gf.astype(mxu_dtype), wkv_gf.astype(mxu_dtype),
                       b_f, w_i, b_i]
        in_specs = [feat_spec, ctx_spec] + [pl.BlockSpec(w.shape, lambda b: (0, 0))
                                            for w in weight_args]
        args = (feat, ctx, *weight_args)

    out = pl.pallas_call(
        _make_kernel(self_context),
        out_shape=jax.ShapeDtypeStruct((Bp, N, E), feature.dtype),
        grid=(grid_b,),
        in_specs=in_specs,
        out_specs=out_spec,
        compiler_params=pltpu.CompilerParams(
            dimension_semantics=("parallel",),
            vmem_limit_bytes=48 * 1024 * 1024),       # safe under v7x's 64 MiB physical
    )(*args)
    return out[:B] if Bp != B else out


# ----------------------------------------------------------------------------
# Pure-JAX reference (RAW per-head parameters — validates head-mean folding and
# projection fusion done in the wrapper).
# ----------------------------------------------------------------------------
def _lambda_ref(x, c, wq, wk, wv, bias, head_num):
    q = x @ wq
    keys = jax.nn.softmax(c @ wk, axis=1)          # softmax over context positions
    vals = c @ wv
    lam = jnp.einsum("bmk,bmv->bkv", keys, vals)
    n = x.shape[1]
    kdim = wk.shape[1]
    qh = q.reshape(x.shape[0], n, head_num, kdim)
    y = jnp.einsum("bnhk,bkv->bnv", qh, lam) / float(head_num)
    if bias is not None:
        y = y + bias
    return y


def reference_forward(feature, params, field_weight=None, *, head_num):
    if field_weight is None:
        field_weight = feature
    gate = jax.nn.sigmoid(_lambda_ref(feature, field_weight,
                                      params["wq_g"], params["wk_g"], params["wv_g"],
                                      None, head_num))
    ff = _lambda_ref(feature, field_weight,
                     params["wq_f"], params["wk_f"], params["wv_f"],
                     params["b_f"], head_num)
    filt = ff * gate
    return _lambda_ref(filt, filt,
                       params["wq_i"], params["wk_i"], params["wv_i"],
                       params["b_i"], head_num)


# ----------------------------------------------------------------------------
def init_params(key, embed_size, head_num):
    kdim = embed_size // head_num
    ks = jax.random.split(key, 11)
    s = 0.1
    return {
        # gate: LambdaLayerV2(E, H, 1, bias=False)
        "wq_g": s * jax.random.normal(ks[0], (embed_size, embed_size), jnp.float32),
        "wk_g": s * jax.random.normal(ks[1], (embed_size, kdim), jnp.float32),
        "wv_g": s * jax.random.normal(ks[2], (embed_size, 1), jnp.float32),
        # featureField: LambdaLayerV2(E, H, E)
        "wq_f": s * jax.random.normal(ks[3], (embed_size, embed_size), jnp.float32),
        "wk_f": s * jax.random.normal(ks[4], (embed_size, kdim), jnp.float32),
        "wv_f": s * jax.random.normal(ks[5], (embed_size, embed_size), jnp.float32),
        "b_f": s * jax.random.normal(ks[6], (1, embed_size), jnp.float32),
        # interaction: LambdaLayerV2(E, H, E)
        "wq_i": s * jax.random.normal(ks[7], (embed_size, embed_size), jnp.float32),
        "wk_i": s * jax.random.normal(ks[8], (embed_size, kdim), jnp.float32),
        "wv_i": s * jax.random.normal(ks[9], (embed_size, embed_size), jnp.float32),
        "b_i": s * jax.random.normal(ks[10], (1, embed_size), jnp.float32),
    }


if __name__ == "__main__":
    batch = 2
    feature_numb = 8        # N: number of feature fields
    embed_size = 32         # E
    head_num = 4            # H (embed_size must be divisible by head_num)

    key = jax.random.PRNGKey(0)
    k_feat, k_ctx, k_par, k_big = jax.random.split(key, 4)
    feature = jax.random.normal(k_feat, (batch, feature_numb, embed_size), jnp.float32)
    params = init_params(k_par, embed_size, head_num)

    # bf16 MXU operands + approx-reciprocal softmax -> tolerance widened vs pure-f32.
    TOL = dict(atol=2e-2, rtol=2e-2)

    # --- self-context path (fieldWeight=None) ---
    out = jax.block_until_ready(
        lambda_interaction_forward(feature, params, field_weight=None,
                                   head_num=head_num))
    ref = jax.block_until_ready(
        reference_forward(feature, params, field_weight=None, head_num=head_num))
    np.testing.assert_allclose(np.asarray(out), np.asarray(ref), **TOL)

    # --- explicit fieldWeight path (different context length) ---
    field_w = jax.random.normal(k_ctx, (batch, 6, embed_size), jnp.float32)
    out2 = jax.block_until_ready(
        lambda_interaction_forward(feature, params, field_weight=field_w,
                                   head_num=head_num))
    ref2 = jax.block_until_ready(
        reference_forward(feature, params, field_weight=field_w, head_num=head_num))
    np.testing.assert_allclose(np.asarray(out2), np.asarray(ref2), **TOL)

    # --- batch not a multiple of the block: exercises zero-padding + multi-step grid ---
    feat_big = jax.random.normal(k_big, (10, feature_numb, embed_size), jnp.float32)
    out3 = jax.block_until_ready(
        lambda_interaction_forward(feat_big, params, field_weight=None,
                                   head_num=head_num))
    ref3 = jax.block_until_ready(
        reference_forward(feat_big, params, field_weight=None, head_num=head_num))
    np.testing.assert_allclose(np.asarray(out3), np.asarray(ref3), **TOL)

    print("KERNEL_OK")
</pallas_src>

<mosaic_0001>
module attributes {stable_mosaic.version = 11 : i64} {
  func.func @kernel(%arg0: i32, %arg1: memref<2x8x32xbf16, #tpu.memory_space<vmem>>, %arg2: memref<32x65xbf16, #tpu.memory_space<vmem>>, %arg3: memref<1x32xf32, #tpu.memory_space<vmem>>, %arg4: memref<32x48xbf16, #tpu.memory_space<vmem>>, %arg5: memref<1x32xf32, #tpu.memory_space<vmem>>, %arg6: memref<2x8x32xf32, #tpu.memory_space<vmem>>) attributes {dimension_semantics = [#tpu.dimension_semantics<parallel>], iteration_bounds = array<i64: 1>, scalar_prefetch = 0 : i64, scratch_operands = 0 : i64, tpu.core_type = #tpu.core_type<tc>, window_params = [{transform_indices = @transform_0, window_bounds = array<i64: 2, 8, 32>}, {pipeline_mode = #tpu.pipeline_mode<synchronous>, transform_indices = @transform_1, window_bounds = array<i64: 32, 65>}, {pipeline_mode = #tpu.pipeline_mode<synchronous>, transform_indices = @transform_2, window_bounds = array<i64: 1, 32>}, {pipeline_mode = #tpu.pipeline_mode<synchronous>, transform_indices = @transform_3, window_bounds = array<i64: 32, 48>}, {pipeline_mode = #tpu.pipeline_mode<synchronous>, transform_indices = @transform_4, window_bounds = array<i64: 1, 32>}, {transform_indices = @transform_5, window_bounds = array<i64: 2, 8, 32>}]} {
    %c0 = arith.constant 0 : index
    %c0_0 = arith.constant 0 : index
    %c0_1 = arith.constant 0 : index
    %0 = vector.load %arg1[%c0, %c0_0, %c0_1] : memref<2x8x32xbf16, #tpu.memory_space<vmem>>, vector<2x8x32xbf16>
    %1 = vector.shape_cast %0 : vector<2x8x32xbf16> to vector<16x32xbf16>
    %c0_2 = arith.constant 0 : index
    %c0_3 = arith.constant 0 : index
    %2 = vector.load %arg2[%c0_2, %c0_3] : memref<32x65xbf16, #tpu.memory_space<vmem>>, vector<32x65xbf16>
    %cst = arith.constant dense<0.000000e+00> : vector<16x65xf32>
    %3 = tpu.matmul %1, %2, %cst {dimension_numbers = #tpu.dot_dimension_numbers<[1], [0], [0], [1], [0, 0, 1, 1], [], []>} : vector<16x32xbf16>, vector<32x65xbf16>, vector<16x65xf32> -> vector<16x65xf32>
    %4 = vector.shape_cast %3 : vector<16x65xf32> to vector<2x8x65xf32>
    %5 = vector.extract_strided_slice %4 {offsets = [0, 0, 0], sizes = [2, 8, 8], strides = [1, 1, 1]} : vector<2x8x65xf32> to vector<2x8x8xf32>
    %6 = vector.extract_strided_slice %4 {offsets = [0, 0, 8], sizes = [2, 8, 8], strides = [1, 1, 1]} : vector<2x8x65xf32> to vector<2x8x8xf32>
    %7 = vector.extract_strided_slice %4 {offsets = [0, 0, 16], sizes = [2, 8, 32], strides = [1, 1, 1]} : vector<2x8x65xf32> to vector<2x8x32xf32>
    %8 = vector.extract_strided_slice %4 {offsets = [0, 0, 48], sizes = [2, 8, 16], strides = [1, 1, 1]} : vector<2x8x65xf32> to vector<2x8x16xf32>
    %9 = vector.extract_strided_slice %4 {offsets = [0, 0, 64], sizes = [2, 8, 1], strides = [1, 1, 1]} : vector<2x8x65xf32> to vector<2x8x1xf32>
    %cst_4 = arith.constant dense<0xFF800000> : vector<2x16xf32>
    %10 = vector.multi_reduction <maximumf>, %8, %cst_4 [1] : vector<2x8x16xf32> to vector<2x16xf32>
    %11 = vector.shape_cast %10 : vector<2x16xf32> to vector<2x1x16xf32>
    %12 = vector.broadcast %11 : vector<2x1x16xf32> to vector<2x8x16xf32>
    %13 = arith.subf %8, %12 : vector<2x8x16xf32>
    %14 = math.exp %13 : vector<2x8x16xf32>
    %cst_5 = arith.constant dense<0.000000e+00> : vector<2x16xf32>
    %15 = vector.multi_reduction <add>, %14, %cst_5 [1] : vector<2x8x16xf32> to vector<2x16xf32>
    %16 = vector.shape_cast %15 : vector<2x16xf32> to vector<2x1x16xf32>
    %17 = tpu.reciprocal %16 {approx = true} : vector<2x1x16xf32> -> vector<2x1x16xf32>
    %18 = vector.broadcast %17 : vector<2x1x16xf32> to vector<2x8x16xf32>
    %19 = arith.mulf %14, %18 : vector<2x8x16xf32>
    %20 = vector.extract_strided_slice %19 {offsets = [0, 0, 0], sizes = [2, 8, 8], strides = [1, 1, 1]} : vector<2x8x16xf32> to vector<2x8x8xf32>
    %21 = vector.extract_strided_slice %19 {offsets = [0, 0, 8], sizes = [2, 8, 8], strides = [1, 1, 1]} : vector<2x8x16xf32> to vector<2x8x8xf32>
    %22 = vector.extract_strided_slice %20 {offsets = [0, 0, 0], sizes = [2, 8, 1], strides = [1, 1, 1]} : vector<2x8x8xf32> to vector<2x8x1xf32>
    %23 = vector.broadcast %22 : vector<2x8x1xf32> to vector<2x8x32xf32>
    %24 = arith.mulf %23, %7 : vector<2x8x32xf32>
    %cst_6 = arith.constant dense<0.000000e+00> : vector<2x32xf32>
    %25 = vector.multi_reduction <add>, %24, %cst_6 [1] : vector<2x8x32xf32> to vector<2x32xf32>
    %26 = vector.shape_cast %25 : vector<2x32xf32> to vector<2x1x32xf32>
    %27 = vector.extract_strided_slice %20 {offsets = [0, 0, 1], sizes = [2, 8, 1], strides = [1, 1, 1]} : vector<2x8x8xf32> to vector<2x8x1xf32>
    %28 = vector.broadcast %27 : vector<2x8x1xf32> to vector<2x8x32xf32>
    %29 = arith.mulf %28, %7 : vector<2x8x32xf32>
    %cst_7 = arith.constant dense<0.000000e+00> : vector<2x32xf32>
    %30 = vector.multi_reduction <add>, %29, %cst_7 [1] : vector<2x8x32xf32> to vector<2x32xf32>
    %31 = vector.shape_cast %30 : vector<2x32xf32> to vector<2x1x32xf32>
    %32 = vector.extract_strided_slice %20 {offsets = [0, 0, 2], sizes = [2, 8, 1], strides = [1, 1, 1]} : vector<2x8x8xf32> to vector<2x8x1xf32>
    %33 = vector.broadcast %32 : vector<2x8x1xf32> to vector<2x8x32xf32>
    %34 = arith.mulf %33, %7 : vector<2x8x32xf32>
    %cst_8 = arith.constant dense<0.000000e+00> : vector<2x32xf32>
    %35 = vector.multi_reduction <add>, %34, %cst_8 [1] : vector<2x8x32xf32> to vector<2x32xf32>
    %36 = vector.shape_cast %35 : vector<2x32xf32> to vector<2x1x32xf32>
    %37 = vector.extract_strided_slice %20 {offsets = [0, 0, 3], sizes = [2, 8, 1], strides = [1, 1, 1]} : vector<2x8x8xf32> to vector<2x8x1xf32>
    %38 = vector.broadcast %37 : vector<2x8x1xf32> to vector<2x8x32xf32>
    %39 = arith.mulf %38, %7 : vector<2x8x32xf32>
    %cst_9 = arith.constant dense<0.000000e+00> : vector<2x32xf32>
    %40 = vector.multi_reduction <add>, %39, %cst_9 [1] : vector<2x8x32xf32> to vector<2x32xf32>
    %41 = vector.shape_cast %40 : vector<2x32xf32> to vector<2x1x32xf32>
    %42 = vector.extract_strided_slice %20 {offsets = [0, 0, 4], sizes = [2, 8, 1], strides = [1, 1, 1]} : vector<2x8x8xf32> to vector<2x8x1xf32>
    %43 = vector.broadcast %42 : vector<2x8x1xf32> to vector<2x8x32xf32>
    %44 = arith.mulf %43, %7 : vector<2x8x32xf32>
    %cst_10 = arith.constant dense<0.000000e+00> : vector<2x32xf32>
    %45 = vector.multi_reduction <add>, %44, %cst_10 [1] : vector<2x8x32xf32> to vector<2x32xf32>
    %46 = vector.shape_cast %45 : vector<2x32xf32> to vector<2x1x32xf32>
    %47 = vector.extract_strided_slice %20 {offsets = [0, 0, 5], sizes = [2, 8, 1], strides = [1, 1, 1]} : vector<2x8x8xf32> to vector<2x8x1xf32>
    %48 = vector.broadcast %47 : vector<2x8x1xf32> to vector<2x8x32xf32>
    %49 = arith.mulf %48, %7 : vector<2x8x32xf32>
    %cst_11 = arith.constant dense<0.000000e+00> : vector<2x32xf32>
    %50 = vector.multi_reduction <add>, %49, %cst_11 [1] : vector<2x8x32xf32> to vector<2x32xf32>
    %51 = vector.shape_cast %50 : vector<2x32xf32> to vector<2x1x32xf32>
    %52 = vector.extract_strided_slice %20 {offsets = [0, 0, 6], sizes = [2, 8, 1], strides = [1, 1, 1]} : vector<2x8x8xf32> to vector<2x8x1xf32>
    %53 = vector.broadcast %52 : vector<2x8x1xf32> to vector<2x8x32xf32>
    %54 = arith.mulf %53, %7 : vector<2x8x32xf32>
    %cst_12 = arith.constant dense<0.000000e+00> : vector<2x32xf32>
    %55 = vector.multi_reduction <add>, %54, %cst_12 [1] : vector<2x8x32xf32> to vector<2x32xf32>
    %56 = vector.shape_cast %55 : vector<2x32xf32> to vector<2x1x32xf32>
    %57 = vector.extract_strided_slice %20 {offsets = [0, 0, 7], sizes = [2, 8, 1], strides = [1, 1, 1]} : vector<2x8x8xf32> to vector<2x8x1xf32>
    %58 = vector.broadcast %57 : vector<2x8x1xf32> to vector<2x8x32xf32>
    %59 = arith.mulf %58, %7 : vector<2x8x32xf32>
    %cst_13 = arith.constant dense<0.000000e+00> : vector<2x32xf32>
    %60 = vector.multi_reduction <add>, %59, %cst_13 [1] : vector<2x8x32xf32> to vector<2x32xf32>
    %61 = vector.shape_cast %60 : vector<2x32xf32> to vector<2x1x32xf32>
    %62 = tpu.concatenate %26, %31, %36, %41, %46, %51, %56, %61 in 1 : vector<2x1x32xf32>, vector<2x1x32xf32>, vector<2x1x32xf32>, vector<2x1x32xf32>, vector<2x1x32xf32>, vector<2x1x32xf32>, vector<2x1x32xf32>, vector<2x1x32xf32> -> vector<2x8x32xf32>
    %c0_14 = arith.constant 0 : index
    %c0_15 = arith.constant 0 : index
    %63 = vector.load %arg3[%c0_14, %c0_15] : memref<1x32xf32, #tpu.memory_space<vmem>>, vector<1x32xf32>
    %64 = vector.extract_strided_slice %5 {offsets = [0, 0, 0], sizes = [2, 8, 1], strides = [1, 1, 1]} : vector<2x8x8xf32> to vector<2x8x1xf32>
    %65 = vector.extract_strided_slice %62 {offsets = [0, 0, 0], sizes = [2, 1, 32], strides = [1, 1, 1]} : vector<2x8x32xf32> to vector<2x1x32xf32>
    %66 = vector.broadcast %64 : vector<2x8x1xf32> to vector<2x8x32xf32>
    %67 = vector.broadcast %65 : vector<2x1x32xf32> to vector<2x8x32xf32>
    %68 = arith.mulf %66, %67 : vector<2x8x32xf32>
    %69 = vector.shape_cast %63 : vector<1x32xf32> to vector<1x1x32xf32>
    %70 = vector.broadcast %69 : vector<1x1x32xf32> to vector<2x8x32xf32>
    %71 = arith.addf %70, %68 : vector<2x8x32xf32>
    %72 = vector.extract_strided_slice %5 {offsets = [0, 0, 1], sizes = [2, 8, 1], strides = [1, 1, 1]} : vector<2x8x8xf32> to vector<2x8x1xf32>
    %73 = vector.extract_strided_slice %62 {offsets = [0, 1, 0], sizes = [2, 1, 32], strides = [1, 1, 1]} : vector<2x8x32xf32> to vector<2x1x32xf32>
    %74 = vector.broadcast %72 : vector<2x8x1xf32> to vector<2x8x32xf32>
    %75 = vector.broadcast %73 : vector<2x1x32xf32> to vector<2x8x32xf32>
    %76 = arith.mulf %74, %75 : vector<2x8x32xf32>
    %77 = arith.addf %71, %76 : vector<2x8x32xf32>
    %78 = vector.extract_strided_slice %5 {offsets = [0, 0, 2], sizes = [2, 8, 1], strides = [1, 1, 1]} : vector<2x8x8xf32> to vector<2x8x1xf32>
    %79 = vector.extract_strided_slice %62 {offsets = [0, 2, 0], sizes = [2, 1, 32], strides = [1, 1, 1]} : vector<2x8x32xf32> to vector<2x1x32xf32>
    %80 = vector.broadcast %78 : vector<2x8x1xf32> to vector<2x8x32xf32>
    %81 = vector.broadcast %79 : vector<2x1x32xf32> to vector<2x8x32xf32>
    %82 = arith.mulf %80, %81 : vector<2x8x32xf32>
    %83 = arith.addf %77, %82 : vector<2x8x32xf32>
    %84 = vector.extract_strided_slice %5 {offsets = [0, 0, 3], sizes = [2, 8, 1], strides = [1, 1, 1]} : vector<2x8x8xf32> to vector<2x8x1xf32>
    %85 = vector.extract_strided_slice %62 {offsets = [0, 3, 0], sizes = [2, 1, 32], strides = [1, 1, 1]} : vector<2x8x32xf32> to vector<2x1x32xf32>
    %86 = vector.broadcast %84 : vector<2x8x1xf32> to vector<2x8x32xf32>
    %87 = vector.broadcast %85 : vector<2x1x32xf32> to vector<2x8x32xf32>
    %88 = arith.mulf %86, %87 : vector<2x8x32xf32>
    %89 = arith.addf %83, %88 : vector<2x8x32xf32>
    %90 = vector.extract_strided_slice %5 {offsets = [0, 0, 4], sizes = [2, 8, 1], strides = [1, 1, 1]} : vector<2x8x8xf32> to vector<2x8x1xf32>
    %91 = vector.extract_strided_slice %62 {offsets = [0, 4, 0], sizes = [2, 1, 32], strides = [1, 1, 1]} : vector<2x8x32xf32> to vector<2x1x32xf32>
    %92 = vector.broadcast %90 : vector<2x8x1xf32> to vector<2x8x32xf32>
    %93 = vector.broadcast %91 : vector<2x1x32xf32> to vector<2x8x32xf32>
    %94 = arith.mulf %92, %93 : vector<2x8x32xf32>
    %95 = arith.addf %89, %94 : vector<2x8x32xf32>
    %96 = vector.extract_strided_slice %5 {offsets = [0, 0, 5], sizes = [2, 8, 1], strides = [1, 1, 1]} : vector<2x8x8xf32> to vector<2x8x1xf32>
    %97 = vector.extract_strided_slice %62 {offsets = [0, 5, 0], sizes = [2, 1, 32], strides = [1, 1, 1]} : vector<2x8x32xf32> to vector<2x1x32xf32>
    %98 = vector.broadcast %96 : vector<2x8x1xf32> to vector<2x8x32xf32>
    %99 = vector.broadcast %97 : vector<2x1x32xf32> to vector<2x8x32xf32>
    %100 = arith.mulf %98, %99 : vector<2x8x32xf32>
    %101 = arith.addf %95, %100 : vector<2x8x32xf32>
    %102 = vector.extract_strided_slice %5 {offsets = [0, 0, 6], sizes = [2, 8, 1], strides = [1, 1, 1]} : vector<2x8x8xf32> to vector<2x8x1xf32>
    %103 = vector.extract_strided_slice %62 {offsets = [0, 6, 0], sizes = [2, 1, 32], strides = [1, 1, 1]} : vector<2x8x32xf32> to vector<2x1x32xf32>
    %104 = vector.broadcast %102 : vector<2x8x1xf32> to vector<2x8x32xf32>
    %105 = vector.broadcast %103 : vector<2x1x32xf32> to vector<2x8x32xf32>
    %106 = arith.mulf %104, %105 : vector<2x8x32xf32>
    %107 = arith.addf %101, %106 : vector<2x8x32xf32>
    %108 = vector.extract_strided_slice %5 {offsets = [0, 0, 7], sizes = [2, 8, 1], strides = [1, 1, 1]} : vector<2x8x8xf32> to vector<2x8x1xf32>
    %109 = vector.extract_strided_slice %62 {offsets = [0, 7, 0], sizes = [2, 1, 32], strides = [1, 1, 1]} : vector<2x8x32xf32> to vector<2x1x32xf32>
    %110 = vector.broadcast %108 : vector<2x8x1xf32> to vector<2x8x32xf32>
    %111 = vector.broadcast %109 : vector<2x1x32xf32> to vector<2x8x32xf32>
    %112 = arith.mulf %110, %111 : vector<2x8x32xf32>
    %113 = arith.addf %107, %112 : vector<2x8x32xf32>
    %114 = vector.broadcast %9 : vector<2x8x1xf32> to vector<2x8x8xf32>
    %115 = arith.mulf %21, %114 : vector<2x8x8xf32>
    %cst_16 = arith.constant dense<0.000000e+00> : vector<2x8xf32>
    %116 = vector.multi_reduction <add>, %115, %cst_16 [1] : vector<2x8x8xf32> to vector<2x8xf32>
    %117 = vector.shape_cast %116 : vector<2x8xf32> to vector<2x1x8xf32>
    %118 = vector.broadcast %117 : vector<2x1x8xf32> to vector<2x8x8xf32>
    %119 = arith.mulf %6, %118 : vector<2x8x8xf32>
    %cst_17 = arith.constant dense<0.000000e+00> : vector<2x8xf32>
    %120 = vector.multi_reduction <add>, %119, %cst_17 [2] : vector<2x8x8xf32> to vector<2x8xf32>
    %121 = vector.shape_cast %120 : vector<2x8xf32> to vector<2x8x1xf32>
    %122 = arith.negf %121 : vector<2x8x1xf32>
    %123 = math.exp %122 : vector<2x8x1xf32>
    %cst_18 = arith.constant 1.000000e+00 : f32
    %124 = vector.broadcast %cst_18 : f32 to vector<2x8x1xf32>
    %125 = arith.addf %124, %123 : vector<2x8x1xf32>
    %126 = arith.divf %124, %125 : vector<2x8x1xf32>
    %127 = vector.broadcast %126 : vector<2x8x1xf32> to vector<2x8x32xf32>
    %128 = arith.mulf %113, %127 : vector<2x8x32xf32>
    %129 = vector.shape_cast %128 : vector<2x8x32xf32> to vector<16x32xf32>
    %130 = arith.truncf %129 : vector<16x32xf32> to vector<16x32xbf16>
    %c0_19 = arith.constant 0 : index
    %c0_20 = arith.constant 0 : index
    %131 = vector.load %arg4[%c0_19, %c0_20] : memref<32x48xbf16, #tpu.memory_space<vmem>>, vector<32x48xbf16>
    %cst_21 = arith.constant dense<0.000000e+00> : vector<16x48xf32>
    %132 = tpu.matmul %130, %131, %cst_21 {dimension_numbers = #tpu.dot_dimension_numbers<[1], [0], [0], [1], [0, 0, 1, 1], [], []>} : vector<16x32xbf16>, vector<32x48xbf16>, vector<16x48xf32> -> vector<16x48xf32>
    %133 = vector.shape_cast %132 : vector<16x48xf32> to vector<2x8x48xf32>
    %134 = vector.extract_strided_slice %133 {offsets = [0, 0, 0], sizes = [2, 8, 32], strides = [1, 1, 1]} : vector<2x8x48xf32> to vector<2x8x32xf32>
    %135 = vector.extract_strided_slice %133 {offsets = [0, 0, 32], sizes = [2, 8, 8], strides = [1, 1, 1]} : vector<2x8x48xf32> to vector<2x8x8xf32>
    %136 = vector.extract_strided_slice %133 {offsets = [0, 0, 40], sizes = [2, 8, 8], strides = [1, 1, 1]} : vector<2x8x48xf32> to vector<2x8x8xf32>
    %cst_22 = arith.constant dense<0xFF800000> : vector<2x8xf32>
    %137 = vector.multi_reduction <maximumf>, %136, %cst_22 [1] : vector<2x8x8xf32> to vector<2x8xf32>
    %138 = vector.shape_cast %137 : vector<2x8xf32> to vector<2x1x8xf32>
    %139 = vector.broadcast %138 : vector<2x1x8xf32> to vector<2x8x8xf32>
    %140 = arith.subf %136, %139 : vector<2x8x8xf32>
    %141 = math.exp %140 : vector<2x8x8xf32>
    %cst_23 = arith.constant dense<0.000000e+00> : vector<2x8xf32>
    %142 = vector.multi_reduction <add>, %141, %cst_23 [1] : vector<2x8x8xf32> to vector<2x8xf32>
    %143 = vector.shape_cast %142 : vector<2x8xf32> to vector<2x1x8xf32>
    %144 = tpu.reciprocal %143 {approx = true} : vector<2x1x8xf32> -> vector<2x1x8xf32>
    %145 = vector.broadcast %144 : vector<2x1x8xf32> to vector<2x8x8xf32>
    %146 = arith.mulf %141, %145 : vector<2x8x8xf32>
    %147 = vector.extract_strided_slice %146 {offsets = [0, 0, 0], sizes = [2, 8, 1], strides = [1, 1, 1]} : vector<2x8x8xf32> to vector<2x8x1xf32>
    %148 = vector.broadcast %147 : vector<2x8x1xf32> to vector<2x8x32xf32>
    %149 = arith.mulf %148, %134 : vector<2x8x32xf32>
    %cst_24 = arith.constant dense<0.000000e+00> : vector<2x32xf32>
    %150 = vector.multi_reduction <add>, %149, %cst_24 [1] : vector<2x8x32xf32> to vector<2x32xf32>
    %151 = vector.shape_cast %150 : vector<2x32xf32> to vector<2x1x32xf32>
    %152 = vector.extract_strided_slice %146 {offsets = [0, 0, 1], sizes = [2, 8, 1], strides = [1, 1, 1]} : vector<2x8x8xf32> to vector<2x8x1xf32>
    %153 = vector.broadcast %152 : vector<2x8x1xf32> to vector<2x8x32xf32>
    %154 = arith.mulf %153, %134 : vector<2x8x32xf32>
    %cst_25 = arith.constant dense<0.000000e+00> : vector<2x32xf32>
    %155 = vector.multi_reduction <add>, %154, %cst_25 [1] : vector<2x8x32xf32> to vector<2x32xf32>
    %156 = vector.shape_cast %155 : vector<2x32xf32> to vector<2x1x32xf32>
    %157 = vector.extract_strided_slice %146 {offsets = [0, 0, 2], sizes = [2, 8, 1], strides = [1, 1, 1]} : vector<2x8x8xf32> to vector<2x8x1xf32>
    %158 = vector.broadcast %157 : vector<2x8x1xf32> to vector<2x8x32xf32>
    %159 = arith.mulf %158, %134 : vector<2x8x32xf32>
    %cst_26 = arith.constant dense<0.000000e+00> : vector<2x32xf32>
    %160 = vector.multi_reduction <add>, %159, %cst_26 [1] : vector<2x8x32xf32> to vector<2x32xf32>
    %161 = vector.shape_cast %160 : vector<2x32xf32> to vector<2x1x32xf32>
    %162 = vector.extract_strided_slice %146 {offsets = [0, 0, 3], sizes = [2, 8, 1], strides = [1, 1, 1]} : vector<2x8x8xf32> to vector<2x8x1xf32>
    %163 = vector.broadcast %162 : vector<2x8x1xf32> to vector<2x8x32xf32>
    %164 = arith.mulf %163, %134 : vector<2x8x32xf32>
    %cst_27 = arith.constant dense<0.000000e+00> : vector<2x32xf32>
    %165 = vector.multi_reduction <add>, %164, %cst_27 [1] : vector<2x8x32xf32> to vector<2x32xf32>
    %166 = vector.shape_cast %165 : vector<2x32xf32> to vector<2x1x32xf32>
    %167 = vector.extract_strided_slice %146 {offsets = [0, 0, 4], sizes = [2, 8, 1], strides = [1, 1, 1]} : vector<2x8x8xf32> to vector<2x8x1xf32>
    %168 = vector.broadcast %167 : vector<2x8x1xf32> to vector<2x8x32xf32>
    %169 = arith.mulf %168, %134 : vector<2x8x32xf32>
    %cst_28 = arith.constant dense<0.000000e+00> : vector<2x32xf32>
    %170 = vector.multi_reduction <add>, %169, %cst_28 [1] : vector<2x8x32xf32> to vector<2x32xf32>
    %171 = vector.shape_cast %170 : vector<2x32xf32> to vector<2x1x32xf32>
    %172 = vector.extract_strided_slice %146 {offsets = [0, 0, 5], sizes = [2, 8, 1], strides = [1, 1, 1]} : vector<2x8x8xf32> to vector<2x8x1xf32>
    %173 = vector.broadcast %172 : vector<2x8x1xf32> to vector<2x8x32xf32>
    %174 = arith.mulf %173, %134 : vector<2x8x32xf32>
    %cst_29 = arith.constant dense<0.000000e+00> : vector<2x32xf32>
    %175 = vector.multi_reduction <add>, %174, %cst_29 [1] : vector<2x8x32xf32> to vector<2x32xf32>
    %176 = vector.shape_cast %175 : vector<2x32xf32> to vector<2x1x32xf32>
    %177 = vector.extract_strided_slice %146 {offsets = [0, 0, 6], sizes = [2, 8, 1], strides = [1, 1, 1]} : vector<2x8x8xf32> to vector<2x8x1xf32>
    %178 = vector.broadcast %177 : vector<2x8x1xf32> to vector<2x8x32xf32>
    %179 = arith.mulf %178, %134 : vector<2x8x32xf32>
    %cst_30 = arith.constant dense<0.000000e+00> : vector<2x32xf32>
    %180 = vector.multi_reduction <add>, %179, %cst_30 [1] : vector<2x8x32xf32> to vector<2x32xf32>
    %181 = vector.shape_cast %180 : vector<2x32xf32> to vector<2x1x32xf32>
    %182 = vector.extract_strided_slice %146 {offsets = [0, 0, 7], sizes = [2, 8, 1], strides = [1, 1, 1]} : vector<2x8x8xf32> to vector<2x8x1xf32>
    %183 = vector.broadcast %182 : vector<2x8x1xf32> to vector<2x8x32xf32>
    %184 = arith.mulf %183, %134 : vector<2x8x32xf32>
    %cst_31 = arith.constant dense<0.000000e+00> : vector<2x32xf32>
    %185 = vector.multi_reduction <add>, %184, %cst_31 [1] : vector<2x8x32xf32> to vector<2x32xf32>
    %186 = vector.shape_cast %185 : vector<2x32xf32> to vector<2x1x32xf32>
    %187 = tpu.concatenate %151, %156, %161, %166, %171, %176, %181, %186 in 1 : vector<2x1x32xf32>, vector<2x1x32xf32>, vector<2x1x32xf32>, vector<2x1x32xf32>, vector<2x1x32xf32>, vector<2x1x32xf32>, vector<2x1x32xf32>, vector<2x1x32xf32> -> vector<2x8x32xf32>
    %c0_32 = arith.constant 0 : index
    %c0_33 = arith.constant 0 : index
    %188 = vector.load %arg5[%c0_32, %c0_33] : memref<1x32xf32, #tpu.memory_space<vmem>>, vector<1x32xf32>
    %189 = vector.extract_strided_slice %135 {offsets = [0, 0, 0], sizes = [2, 8, 1], strides = [1, 1, 1]} : vector<2x8x8xf32> to vector<2x8x1xf32>
    %190 = vector.extract_strided_slice %187 {offsets = [0, 0, 0], sizes = [2, 1, 32], strides = [1, 1, 1]} : vector<2x8x32xf32> to vector<2x1x32xf32>
    %191 = vector.broadcast %189 : vector<2x8x1xf32> to vector<2x8x32xf32>
    %192 = vector.broadcast %190 : vector<2x1x32xf32> to vector<2x8x32xf32>
    %193 = arith.mulf %191, %192 : vector<2x8x32xf32>
    %194 = vector.shape_cast %188 : vector<1x32xf32> to vector<1x1x32xf32>
    %195 = vector.broadcast %194 : vector<1x1x32xf32> to vector<2x8x32xf32>
    %196 = arith.addf %195, %193 : vector<2x8x32xf32>
    %197 = vector.extract_strided_slice %135 {offsets = [0, 0, 1], sizes = [2, 8, 1], strides = [1, 1, 1]} : vector<2x8x8xf32> to vector<2x8x1xf32>
    %198 = vector.extract_strided_slice %187 {offsets = [0, 1, 0], sizes = [2, 1, 32], strides = [1, 1, 1]} : vector<2x8x32xf32> to vector<2x1x32xf32>
    %199 = vector.broadcast %197 : vector<2x8x1xf32> to vector<2x8x32xf32>
    %200 = vector.broadcast %198 : vector<2x1x32xf32> to vector<2x8x32xf32>
    %201 = arith.mulf %199, %200 : vector<2x8x32xf32>
    %202 = arith.addf %196, %201 : vector<2x8x32xf32>
    %203 = vector.extract_strided_slice %135 {offsets = [0, 0, 2], sizes = [2, 8, 1], strides = [1, 1, 1]} : vector<2x8x8xf32> to vector<2x8x1xf32>
    %204 = vector.extract_strided_slice %187 {offsets = [0, 2, 0], sizes = [2, 1, 32], strides = [1, 1, 1]} : vector<2x8x32xf32> to vector<2x1x32xf32>
    %205 = vector.broadcast %203 : vector<2x8x1xf32> to vector<2x8x32xf32>
    %206 = vector.broadcast %204 : vector<2x1x32xf32> to vector<2x8x32xf32>
    %207 = arith.mulf %205, %206 : vector<2x8x32xf32>
    %208 = arith.addf %202, %207 : vector<2x8x32xf32>
    %209 = vector.extract_strided_slice %135 {offsets = [0, 0, 3], sizes = [2, 8, 1], strides = [1, 1, 1]} : vector<2x8x8xf32> to vector<2x8x1xf32>
    %210 = vector.extract_strided_slice %187 {offsets = [0, 3, 0], sizes = [2, 1, 32], strides = [1, 1, 1]} : vector<2x8x32xf32> to vector<2x1x32xf32>
    %211 = vector.broadcast %209 : vector<2x8x1xf32> to vector<2x8x32xf32>
    %212 = vector.broadcast %210 : vector<2x1x32xf32> to vector<2x8x32xf32>
    %213 = arith.mulf %211, %212 : vector<2x8x32xf32>
    %214 = arith.addf %208, %213 : vector<2x8x32xf32>
    %215 = vector.extract_strided_slice %135 {offsets = [0, 0, 4], sizes = [2, 8, 1], strides = [1, 1, 1]} : vector<2x8x8xf32> to vector<2x8x1xf32>
    %216 = vector.extract_strided_slice %187 {offsets = [0, 4, 0], sizes = [2, 1, 32], strides = [1, 1, 1]} : vector<2x8x32xf32> to vector<2x1x32xf32>
    %217 = vector.broadcast %215 : vector<2x8x1xf32> to vector<2x8x32xf32>
    %218 = vector.broadcast %216 : vector<2x1x32xf32> to vector<2x8x32xf32>
    %219 = arith.mulf %217, %218 : vector<2x8x32xf32>
    %220 = arith.addf %214, %219 : vector<2x8x32xf32>
    %221 = vector.extract_strided_slice %135 {offsets = [0, 0, 5], sizes = [2, 8, 1], strides = [1, 1, 1]} : vector<2x8x8xf32> to vector<2x8x1xf32>
    %222 = vector.extract_strided_slice %187 {offsets = [0, 5, 0], sizes = [2, 1, 32], strides = [1, 1, 1]} : vector<2x8x32xf32> to vector<2x1x32xf32>
    %223 = vector.broadcast %221 : vector<2x8x1xf32> to vector<2x8x32xf32>
    %224 = vector.broadcast %222 : vector<2x1x32xf32> to vector<2x8x32xf32>
    %225 = arith.mulf %223, %224 : vector<2x8x32xf32>
    %226 = arith.addf %220, %225 : vector<2x8x32xf32>
    %227 = vector.extract_strided_slice %135 {offsets = [0, 0, 6], sizes = [2, 8, 1], strides = [1, 1, 1]} : vector<2x8x8xf32> to vector<2x8x1xf32>
    %228 = vector.extract_strided_slice %187 {offsets = [0, 6, 0], sizes = [2, 1, 32], strides = [1, 1, 1]} : vector<2x8x32xf32> to vector<2x1x32xf32>
    %229 = vector.broadcast %227 : vector<2x8x1xf32> to vector<2x8x32xf32>
    %230 = vector.broadcast %228 : vector<2x1x32xf32> to vector<2x8x32xf32>
    %231 = arith.mulf %229, %230 : vector<2x8x32xf32>
    %232 = arith.addf %226, %231 : vector<2x8x32xf32>
    %233 = vector.extract_strided_slice %135 {offsets = [0, 0, 7], sizes = [2, 8, 1], strides = [1, 1, 1]} : vector<2x8x8xf32> to vector<2x8x1xf32>
    %234 = vector.extract_strided_slice %187 {offsets = [0, 7, 0], sizes = [2, 1, 32], strides = [1, 1, 1]} : vector<2x8x32xf32> to vector<2x1x32xf32>
    %235 = vector.broadcast %233 : vector<2x8x1xf32> to vector<2x8x32xf32>
    %236 = vector.broadcast %234 : vector<2x1x32xf32> to vector<2x8x32xf32>
    %237 = arith.mulf %235, %236 : vector<2x8x32xf32>
    %238 = arith.addf %232, %237 : vector<2x8x32xf32>
    %c0_34 = arith.constant 0 : index
    %c0_35 = arith.constant 0 : index
    %c0_36 = arith.constant 0 : index
    %239 = vector.load %arg6[%c0_34, %c0_35, %c0_36] : memref<2x8x32xf32, #tpu.memory_space<vmem>>, vector<2x8x32xf32>
    tpu.vector_store %arg6[%c0_34, %c0_35, %c0_36], %238 {strides = array<i32>} : memref<2x8x32xf32, #tpu.memory_space<vmem>>, vector<2x8x32xf32>,
    return
  }
  func.func @transform_0(%arg0: i32) -> (i32, i32, i32) {
    %c0_i32 = arith.constant 0 : i32
    %c0_i32_0 = arith.constant 0 : i32
    %c0_i32_1 = arith.constant 0 : i32
    return %arg0, %c0_i32, %c0_i32_0 : i32, i32, i32
  }
  func.func @transform_1(%arg0: i32) -> (i32, i32) {
    %c0_i32 = arith.constant 0 : i32
    %c0_i32_0 = arith.constant 0 : i32
    %c0_i32_1 = arith.constant 0 : i32
    return %c0_i32, %c0_i32_0 : i32, i32
  }
  func.func @transform_2(%arg0: i32) -> (i32, i32) {
    %c0_i32 = arith.constant 0 : i32
    %c0_i32_0 = arith.constant 0 : i32
    %c0_i32_1 = arith.constant 0 : i32
    return %c0_i32, %c0_i32_0 : i32, i32
  }
  func.func @transform_3(%arg0: i32) -> (i32, i32) {
    %c0_i32 = arith.constant 0 : i32
    %c0_i32_0 = arith.constant 0 : i32
    %c0_i32_1 = arith.constant 0 : i32
    return %c0_i32, %c0_i32_0 : i32, i32
  }
  func.func @transform_4(%arg0: i32) -> (i32, i32) {
    %c0_i32 = arith.constant 0 : i32
    %c0_i32_0 = arith.constant 0 : i32
    %c0_i32_1 = arith.constant 0 : i32
    return %c0_i32, %c0_i32_0 : i32, i32
  }
  func.func @transform_5(%arg0: i32) -> (i32, i32, i32) {
    %c0_i32 = arith.constant 0 : i32
    %c0_i32_0 = arith.constant 0 : i32
    %c0_i32_1 = arith.constant 0 : i32
    return %arg0, %c0_i32, %c0_i32_0 : i32, i32, i32
  }
}

</mosaic_0001>

<bundles_post_ra>
// kernel: tpu_custom_call.1
= control target key start
LH: loop header
LB: loop body
LE: loop exit
PB: predicated region body
PF: predicated region fallthrough
CT: control target
= control target key end

     0   :  { %10 = vsyncpa [#allocation3], 0  ;;  %s1818_s0 = inlined_call_operand.hbm [shape: bf16[2,8,32], index: 0, kind: input, shape index: {}]   ;;  %s1819_s1 = inlined_call_operand.hbm [shape: bf16[32,65], index: 1, kind: input, shape index: {}]   ;;  %s1820_s2 = inlined_call_operand.vmem [shape: f32[1,32], index: 2, kind: input, shape index: {}]   ;;  %s1821_s3 = inlined_call_operand.hbm [shape: bf16[32,48], index: 3, kind: input, shape index: {}]   ;;  %s1822_s4 = inlined_call_operand.vmem [shape: f32[1,32], index: 4, kind: input, shape index: {}]   ;;  %s1823_s5 = inlined_call_operand.hbm [shape: f32[2,8,32], index: 5, kind: output, shape index: {}]  }
   0x1   :  { %11 = vsyncpa [#allocation6], 0 }
   0x2   :  { %12 = vsyncpa [#allocation4], 0  ;;  %s1432_s18 = smov [#allocation5]   ;;  %s1433_s20 = smov [#allocation2]  }
   0x3   :  { %s30_s19 = sshll.u32 %s1432_s18, 4  ;;  %s18_s21 = sshll.u32 %s1433_s20, 4  ;;  %s31_s19 = int_to_ptr.vmem [resolvable:$true] %s30_s19  ;;  %s19_s21 = int_to_ptr.vmem [resolvable:$true] %s18_s21 }
   0x4   :  { %s1354_s22 = scalar_lea.vmem %s31_s19, 256  ;;  %p1359_p1 = scmp.lt.s32.totalorder %s31_s19, %s31_s19 }
   0x5   :  { %p1355_p0 = scmp.ne.s32.totalorder %s31_s19, %s1354_s22  ;;  %p1360_p2 = scmp.lt.s32.totalorder %s1354_s22, %s1354_s22 }
   0x7   :  { %p1361_p3 = por %p1360_p2, %p1359_p1 }
   0x9   :  { %p1362_p4 = pnand %p1361_p3, %p1355_p0 }
   0xb   :  { %1365 = shalt.err (!%p1362_p4)
}
   0xc   :  { %s1434_s23 = smov 64   ;;  %s1435_s24 = smov 4  }
   0xd   :  { %36 = dma.hbm_to_vmem [thread:$0]  %s1819_s1, 256, %s31_s19, [#allocation6], %s1434_s23, %s1434_s23, %s1435_s24  }
   0xe   :  { %s1374_s27 = scalar_lea.vmem %s19_s21, 128  ;;  %p1379_p6 = scmp.lt.s32.totalorder %s19_s21, %s19_s21 }
   0xf   :  { %p1375_p5 = scmp.ne.s32.totalorder %s19_s21, %s1374_s27  ;;  %p1380_p7 = scmp.lt.s32.totalorder %s1374_s27, %s1374_s27 }
  0x11   :  { %p1381_p8 = por %p1380_p7, %p1379_p6 }
  0x13   :  { %p1382_p9 = pnand %p1381_p8, %p1375_p5 }
  0x15   :  { %1385 = shalt.err (!%p1382_p9)
}
  0x16   :  { %24 = dma.hbm_to_vmem [thread:$0]  %s1818_s0, 128, %s19_s21, [#allocation3], %s1434_s23, %s1434_s23, %s1435_s24  }
  0x17   :  { %s1436_s30 = smov [#allocation7]  }
  0x18   :  { %s44_s6 = sshll.u32 %s1436_s30, 4  ;;  %s45_s6 = int_to_ptr.vmem [resolvable:$true] %s44_s6 }
  0x19   :  { %s1394_s7 = scalar_lea.vmem %s45_s6, 256  ;;  %p1399_p11 = scmp.lt.s32.totalorder %s45_s6, %s45_s6 }
  0x1a   :  { %p1395_p10 = scmp.ne.s32.totalorder %s45_s6, %s1394_s7  ;;  %p1400_p12 = scmp.lt.s32.totalorder %s1394_s7, %s1394_s7 }
  0x1c   :  { %p1401_p13 = por %p1400_p12, %p1399_p11 }
  0x1e   :  { %p1402_p0 = pnand %p1401_p13, %p1395_p10 }
  0x20   :  { %1405 = shalt.err (!%p1402_p0)
}
  0x21   :  { %50 = dma.hbm_to_vmem [thread:$0]  %s1821_s3, 256, %s45_s6, [#allocation6], %s1434_s23, %s1434_s23, %s1435_s24  }
  0x22   :  { %1426 = dma.done.wait [#allocation3], 128  }
  0x23   :  { %1427 = vsyncadd [#allocation3], 4294967168 }
  0x24   :  { %1428 = dma.done.wait [#allocation6], 512  }
  0x25   :  { %1429 = vsyncadd [#allocation6], 4294966784  ;;  %v1437_v0 = vmov 0.0   ;;  %vm1438_vm0 = vmmov 0   ;;  %v1439_v1 = vmov 64   ;;  %v1317_v2 = vld [vmem:[#allocation5 + $0x8] sm:$0xff]  }
  0x26   :  { %1197 = vmatprep.subr.bf16.mxu0 %v1437_v0  ;;  %1201 = vmatprep.mubr.msk.bf16.mxu0 %vm1438_vm0, %v1437_v0  ;;  %v1318_v3 = vld [vmem:[#allocation5] sm:$0xff]   ;;  %v1319_v4 = vld [vmem:[#allocation2] sm:$0xff]   ;;  %vm86_vm1 = vcmask 261120   ;;  %v1440_v5 = vmov 49   ;;  %vm131_vm2 = vcmask 523648   ;;  %v1441_v18 = vmov 48  }
  0x27   :  { %1259 = vset.pattern.permute.xlu0 %v1439_v1  ;;  %1205 = vmatprep.subr.bf16.mxu1 %v1437_v0  ;;  %v1442_v49 = vmov 51   ;;  %v1443_v50 = vmov 50   ;;  %v1444_v51 = vmov 52   ;;  %v1445_v52 = vmov 54   ;;  %s1450_s0 = smov 80   ;;  %s1454_s3 = smov 120  }
  0x28   :  { %1209 = vmatprep.mubr.msk.bf16.mxu1 %vm1438_vm0, %v1437_v0  ;;  %1198 = vmatpush3.bf16.msra.mxu0 %v1317_v2  ;;  %v1446_v53 = vmov 55   ;;  %v1447_v54 = vmov 1   ;;  %v1448_v55 = vmov 2   ;;  %vm629_vm3 = vcmask 523712   ;;  %s1458_s9 = smov 112  }
  0x29   :  { %1199 = vmatprep.subr.bf16.mxu0 %v1437_v0  ;;  %1261 = vset.pattern.permute.xlu1 %v1440_v5  ;;  %vm182_vm4 = vcmask 392320   ;;  %vm365_vm5 = vcmask 1040384   ;;  %vm368_vm6 = vcmask 1041408   ;;  %vm371_vm7 = vcmask 1042432  }
  0x2a   :  { %vm374_vm8 = vcmask 1043456   ;;  %vm377_vm9 = vcmask 1044480   ;;  %vm380_vm10 = vcmask 1045504   ;;  %vm383_vm11 = vcmask 1046528  }
  0x2b   :  { %vm662_vm12 = vcmask 64512   ;;  %vm744_vm13 = vcmask 392512  }
  0x2c   :  { %1200 = vmatpush3.bf16.msra.mxu0 %v1318_v3  ;;  %v1449_v3 = vmov 4  }
  0x2f   :  { %1202 = vmatmul.mubr.msk.bf16.vlgmr.msra.gmra.mxu0 %vm86_vm1, %v1319_v4 }
  0xef   :  { %v1523_v6 = vpop.f32.mrf.mxu0 }
  0xf0   :  { %620 = vperm.xlu0 %1259, %v1523_v6   ;;  %v132_v7 = vsel %vm131_vm2, %v1523_v6, -inf }
  0xf1   :  { %v1203_v8 = vpop.f32.mrf.mxu0  ;;  %v133_v9 = vrot.slane %v132_v7, 4 }
  0xf3   :  { %v1528_v10 = vpop.f32.mrf.mxu0  ;;  %v134_v11 = vmax.f32 %v132_v7, %v133_v9 }
  0xf4   :  { %624 = vperm.xlu0 %1259, %v1528_v10   ;;  %v139_v12 = vsel %vm131_vm2, %v1528_v10, -inf }
  0xf5   :  { %v1204_v13 = vpop.f32.mrf.mxu0  ;;  %v135_v14 = vrot.slane %v134_v11, 2  ;;  %v140_v15 = vrot.slane %v139_v12, 4 }
  0xf7   :  { %v136_v16 = vmax.f32 %v134_v11, %v135_v14  ;;  %v141_v17 = vmax.f32 %v139_v12, %v140_v15  ;;  %v1451_v14 = vmov 53   ;;  %v1452_v15 = vmov 0  }
  0xf8   :  { %1260 = vset.pattern.permute.xlu0 %v1441_v18 }
  0xf9   :  { %v137_v19 = vrot.slane %v136_v16, 1  ;;  %v142_v20 = vrot.slane %v141_v17, 2 }
  0xfb   :  { %v138_v21 = vmax.f32 %v136_v16, %v137_v19  ;;  %v143_v22 = vmax.f32 %v141_v17, %v142_v20  ;;  %v1453_v16 = vmov 3  }
  0xfd   :  { %v146_v23 = vsub.f32 %v1523_v6, %v138_v21  ;;  %v144_v24 = vrot.slane %v143_v22, 1 }
  0xff   :  { %v148_v25 = vmul.f32 1.442695, %v146_v23  ;;  %v145_v26 = vmax.f32 %v143_v22, %v144_v24 }
 0x101   :  { %1322 = vpow2.f32 %v148_v25  ;;  %v147_v27 = vsub.f32 %v1528_v10, %v145_v26  ;;  %v1455_v25 = vmov 5  }
 0x103   :  { %v150_v28 = vmul.f32 1.442695, %v147_v27 }
 0x105   :  { %1324 = vpow2.f32 %v150_v28  ;;  %v1456_v28 = vmov 6  }
 0x10e   :  { %v1323_v29 = vpop.eup %1322 }
 0x10f   :  { %v152_v30 = vsel %vm131_vm2, %v1323_v29, 0.0 }
 0x110   :  { %v153_v31 = vrot.slane %v152_v30, 4 }
 0x112   :  { %v1325_v32 = vpop.eup %1324  ;;  %v154_v33 = vadd.f32 %v153_v31, %v152_v30 }
 0x113   :  { %v159_v34 = vsel %vm131_vm2, %v1325_v32, 0.0 }
 0x114   :  { %v155_v35 = vrot.slane %v154_v33, 2  ;;  %v160_v36 = vrot.slane %v159_v34, 4 }
 0x116   :  { %v156_v37 = vadd.f32 %v155_v35, %v154_v33  ;;  %v161_v38 = vadd.f32 %v160_v36, %v159_v34  ;;  %v1457_v34 = vmov 7  }
 0x118   :  { %v157_v39 = vrot.slane %v156_v37, 1  ;;  %v162_v40 = vrot.slane %v161_v38, 2 }
 0x11a   :  { %v158_v41 = vadd.f32 %v157_v39, %v156_v37  ;;  %v163_v42 = vadd.f32 %v162_v40, %v161_v38 }
 0x11c   :  { %1326 = vrcp.f32 %v158_v41  ;;  %v164_v43 = vrot.slane %v163_v42, 1 }
 0x11e   :  { %v165_v44 = vadd.f32 %v164_v43, %v163_v42 }
 0x120   :  { %1328 = vrcp.f32 %v165_v44 }
 0x129   :  { %v1327_v45 = vpop.eup %1326 }
 0x12a   :  { %v1537_v46 = vmul.f32 %v1327_v45, %v1323_v29 }
 0x12c   :  { %198 = vperm.xlu1 %1261, %v1537_v46   ;;  %172 = vperm.xlu0 %1260, %v1537_v46  }
 0x12d   :  { %v1329_v47 = vpop.eup %1328 }
 0x12e   :  { %v169_v48 = vmul.f32 %v1329_v47, %v1325_v32 }
 0x130   :  { %1262 = vset.pattern.permute.xlu1 %v1441_v18  ;;  %1263 = vset.pattern.permute.xlu0 %v1440_v5 }
 0x131   :  { %202 = vperm.xlu0 %1263, %v169_v48   ;;  %177 = vperm.xlu1 %1262, %v169_v48  }
 0x135   :  { %1265 = vset.pattern.permute.xlu0 %v1442_v49  ;;  %1264 = vset.pattern.permute.xlu1 %v1443_v50 }
 0x136   :  { %246 = vperm.xlu0 %1265, %v1537_v46  }
 0x13a   :  { %1268 = vset.pattern.permute.xlu0 %v1444_v51 }
 0x13b   :  { %274 = vperm.xlu0 %1268, %v169_v48  }
 0x13f   :  { %1270 = vset.pattern.permute.xlu0 %v1445_v52 }
 0x140   :  { %318 = vperm.xlu0 %1270, %v1537_v46  }
 0x144   :  { %1273 = vset.pattern.permute.xlu0 %v1446_v53 }
 0x145   :  { %346 = vperm.xlu0 %1273, %v169_v48  }
 0x149   :  { %1275 = vset.pattern.permute.xlu0 %v1447_v54 }
 0x14a   :  { %424 = vperm.xlu0 %1275, %v1523_v6  }
 0x14e   :  { %1278 = vset.pattern.permute.xlu0 %v1448_v55 }
 0x14f   :  { %456 = vperm.xlu0 %1278, %v1528_v10  }
 0x153   :  { %1280 = vset.pattern.permute.xlu0 %v1449_v3 }
 0x16b   :  { %v621_v56 = vpop.permute.xlu0 %620 }
 0x16c   :  { %v627_v57 = vmul.f32 %v621_v56, %v1537_v46 }
 0x16e   :  { %v630_v58 = vsel %vm629_vm3, %v627_v57, 0.0 }
 0x16f   :  { %v631_v59 = vrot.slane %v630_v58, 4  ;;  %v625_v60 = vpop.permute.xlu0 %624 }
 0x170   :  { %v628_v61 = vmul.f32 %v625_v60, %v169_v48 }
 0x171   :  { %v632_v62 = vadd.f32 %v631_v59, %v630_v58 }
 0x172   :  { %v637_v63 = vsel %vm629_vm3, %v628_v61, 0.0 }
 0x173   :  { %v633_v1 = vrot.slane %v632_v62, 2  ;;  %v638_v2 = vrot.slane %v637_v63, 4 }
 0x175   :  { %v634_v4 = vadd.f32 %v633_v1, %v632_v62  ;;  %v639_v5 = vadd.f32 %v638_v2, %v637_v63 }
 0x177   :  { %v640_v7 = vrot.slane %v639_v5, 2  ;;  %v635_v8 = vrot.slane %v634_v4, 1 }
 0x179   :  { %v641_v9 = vadd.f32 %v640_v7, %v639_v5  ;;  %v636_v11 = vadd.f32 %v635_v8, %v634_v4 }
 0x17b   :  { %646 = vrot.lane.b32.xlu1 %v636_v11, %s1450_s0  ;;  %v642_v12 = vrot.slane %v641_v9, 1 }
 0x17d   :  { %v643_v13 = vadd.f32 %v642_v12, %v641_v9 }
 0x17f   :  { %648 = vrot.lane.b32.xlu1 %v643_v13, %s1450_s0 }
 0x183   :  { %222 = vperm.xlu1 %1264, %v1537_v46  }
 0x187   :  { %226 = vperm.xlu1 %1264, %v169_v48  }
 0x18b   :  { %1266 = vset.pattern.permute.xlu1 %v1442_v49 }
 0x18c   :  { %250 = vperm.xlu1 %1266, %v169_v48  }
 0x190   :  { %1267 = vset.pattern.permute.xlu1 %v1444_v51 }
 0x191   :  { %270 = vperm.xlu1 %1267, %v1537_v46  }
 0x195   :  { %1269 = vset.pattern.permute.xlu1 %v1451_v14 }
 0x196   :  { %294 = vperm.xlu1 %1269, %v1537_v46  }
 0x19a   :  { %298 = vperm.xlu1 %1269, %v169_v48  }
 0x19e   :  { %1271 = vset.pattern.permute.xlu1 %v1445_v52 }
 0x19f   :  { %322 = vperm.xlu1 %1271, %v169_v48  }
 0x1a3   :  { %1272 = vset.pattern.permute.xlu1 %v1446_v53 }
 0x1a4   :  { %342 = vperm.xlu1 %1272, %v1537_v46  }
 0x1a7   :  { %v199_v17 = vpop.permute.xlu1 %198  ;;  %v173_v19 = vpop.permute.xlu0 %172 }
 0x1a8   :  { %1274 = vset.pattern.permute.xlu1 %v1452_v15  ;;  %v205_v27 = vmul.f32 %v199_v17, %v1523_v6  ;;  %v180_v32 = vmul.f32 %v173_v19, %v1523_v6 }
 0x1a9   :  { %389 = vperm.xlu1 %1274, %v1523_v6  }
 0x1aa   :  { %v207_v31 = vsel %vm182_vm4, %v205_v27, 0.0  ;;  %v183_v38 = vsel %vm182_vm4, %v180_v32, 0.0 }
 0x1ab   :  { %v208_v37 = vrot.slane %v207_v31, 4  ;;  %v184_v44 = vrot.slane %v183_v38, 4 }
 0x1ac   :  { %v178_v18 = vpop.permute.xlu1 %177  ;;  %v203_v24 = vpop.permute.xlu0 %202 }
 0x1ad   :  { %394 = vperm.xlu1 %1274, %v1528_v10   ;;  %v206_v33 = vmul.f32 %v203_v24, %v1528_v10  ;;  %v181_v35 = vmul.f32 %v178_v18, %v1528_v10  ;;  %v209_v43 = vadd.f32 %v208_v37, %v207_v31  ;;  %v397_v24 = vlaneseq }
 0x1af   :  { %v214_v39 = vsel %vm182_vm4, %v206_v33, 0.0  ;;  %v190_v42 = vsel %vm182_vm4, %v181_v35, 0.0  ;;  %v210_v53 = vrot.slane %v209_v43, 2 }
 0x1b0   :  { %v215_v47 = vrot.slane %v214_v39, 4  ;;  %v191_v49 = vrot.slane %v190_v42, 4 }
 0x1b1   :  { %1276 = vset.pattern.permute.xlu1 %v1447_v54  ;;  %v247_v26 = vpop.permute.xlu0 %246  ;;  %v185_v54 = vadd.f32 %v184_v44, %v183_v38  ;;  %v211_v4 = vadd.f32 %v210_v53, %v209_v43 }
 0x1b2   :  { %428 = vperm.xlu1 %1276, %v1528_v10   ;;  %v216_v57 = vadd.f32 %v215_v47, %v214_v39  ;;  %v253_v58 = vmul.f32 %v247_v26, %v1523_v6  ;;  %v192_v61 = vadd.f32 %v191_v49, %v190_v42 }
 0x1b3   :  { %v186_v5 = vrot.slane %v185_v54, 2 }
 0x1b4   :  { %v217_v8 = vrot.slane %v216_v57, 2  ;;  %v255_v9 = vsel %vm182_vm4, %v253_v58, 0.0  ;;  %v193_v13 = vrot.slane %v192_v61, 2 }
 0x1b6   :  { %1277 = vset.pattern.permute.xlu1 %v1448_v55  ;;  %v275_v30 = vpop.permute.xlu0 %274 }
 0x1b7   :  { %452 = vperm.xlu1 %1277, %v1523_v6   ;;  %v278_v50 = vmul.f32 %v275_v30, %v1528_v10 }
 0x1b9   :  { %v286_v62 = vsel %vm182_vm4, %v278_v50, 0.0 }
 0x1ba   :  { %v287_v11 = vrot.slane %v286_v62, 4 }
 0x1bb   :  { %1279 = vset.pattern.permute.xlu1 %v1453_v16  ;;  %v319_v40 = vpop.permute.xlu0 %318 }
 0x1bc   :  { %480 = vperm.xlu1 %1279, %v1523_v6   ;;  %v325_v14 = vmul.f32 %v319_v40, %v1523_v6  ;;  %v288_v26 = vadd.f32 %v287_v11, %v286_v62 }
 0x1be   :  { %v289_v42 = vrot.slane %v288_v26, 2 }
 0x1c0   :  { %484 = vperm.xlu1 %1279, %v1528_v10   ;;  %v347_v55 = vpop.permute.xlu0 %346 }
 0x1c1   :  { %v350_v2 = vmul.f32 %v347_v55, %v1528_v10 }
 0x1c3   :  { %v358_v17 = vsel %vm182_vm4, %v350_v2, 0.0 }
 0x1c4   :  { %1281 = vset.pattern.permute.xlu1 %v1449_v3  ;;  %v359_v30 = vrot.slane %v358_v17, 4 }
 0x1c6   :  { %v360_v47 = vadd.f32 %v359_v30, %v358_v17 }
 0x1ed   :  { %v647_v20 = vpop.permute.xlu1 %646 }
 0x1ee   :  { %v652_v21 = vmul.f32 %v647_v20, %v1523_v6 }
 0x1f0   :  { %656 = vrot.lane.b32.xlu1 %v652_v21, %s1454_s3  ;;  %v212_v21 = vrot.slane %v211_v4, 1 }
 0x1f1   :  { %v649_v22 = vpop.permute.xlu1 %648 }
 0x1f2   :  { %v653_v23 = vmul.f32 %v649_v22, %v1528_v10  ;;  %v187_v22 = vadd.f32 %v186_v5, %v185_v54 }
 0x1f4   :  { %512 = vperm.xlu1 %1281, %v1528_v10   ;;  %658 = vrot.lane.b32.xlu0 %v653_v23, %s1454_s3  ;;  %v256_v23 = vrot.slane %v255_v9, 4  ;;  %v188_v38 = vrot.slane %v187_v22, 1 }
 0x1f6   :  { %v257_v39 = vadd.f32 %v256_v23, %v255_v9 }
 0x1f8   :  { %1282 = vset.pattern.permute.xlu1 %v1455_v25  ;;  %508 = vperm.xlu0 %1280, %v1523_v6   ;;  %v258_v55 = vrot.slane %v257_v39, 2 }
 0x1f9   :  { %536 = vperm.xlu1 %1282, %v1523_v6  }
 0x1fa   :  { %v259_v11 = vadd.f32 %v258_v55, %v257_v39 }
 0x1fc   :  { %1283 = vset.pattern.permute.xlu0 %v1455_v25  ;;  %v218_v25 = vadd.f32 %v217_v8, %v216_v57 }
 0x1fd   :  { %1284 = vset.pattern.permute.xlu1 %v1456_v28  ;;  %540 = vperm.xlu0 %1283, %v1528_v10  }
 0x1fe   :  { %564 = vperm.xlu1 %1284, %v1523_v6   ;;  %v223_v29 = vpop.permute.xlu1 %222  ;;  %v219_v50 = vrot.slane %v218_v25, 1 }
 0x1ff   :  { %v229_v45 = vmul.f32 %v223_v29, %v1523_v6  ;;  %v327_v29 = vsel %vm182_vm4, %v325_v14, 0.0 }
 0x200   :  { %v328_v43 = vrot.slane %v327_v29, 4 }
 0x201   :  { %1285 = vset.pattern.permute.xlu0 %v1457_v34  ;;  %v231_v56 = vsel %vm182_vm4, %v229_v45, 0.0 }
 0x202   :  { %568 = vperm.xlu1 %1284, %v1528_v10   ;;  %592 = vperm.xlu0 %1285, %v1523_v6   ;;  %v227_v36 = vpop.permute.xlu1 %226  ;;  %v232_v3 = vrot.slane %v231_v56, 4 }
 0x203   :  { %v230_v41 = vmul.f32 %v227_v36, %v1528_v10 }
 0x204   :  { %v233_v18 = vadd.f32 %v232_v3, %v231_v56 }
 0x205   :  { %v238_v51 = vsel %vm182_vm4, %v230_v41, 0.0  ;;  %v1593_v41 = vshrl.u32 %v397_v24, 7 }
 0x206   :  { %1286 = vset.pattern.permute.xlu1 %v1457_v34  ;;  %v239_v59 = vrot.slane %v238_v51, 4  ;;  %v194_v34 = vadd.f32 %v193_v13, %v192_v61  ;;  %v234_v35 = vrot.slane %v233_v18, 2  ;;  %v329_v61 = vadd.f32 %v328_v43, %v327_v29 }
 0x207   :  { %596 = vperm.xlu1 %1286, %v1528_v10   ;;  %v251_v46 = vpop.permute.xlu1 %250 }
 0x208   :  { %v254_v48 = vmul.f32 %v251_v46, %v1528_v10  ;;  %v240_v12 = vadd.f32 %v239_v59, %v238_v51  ;;  %v213_v46 = vadd.f32 %v212_v21, %v211_v4  ;;  %v195_v51 = vrot.slane %v194_v34, 1 }
 0x209   :  { %v189_v59 = vadd.f32 %v188_v38, %v187_v22  ;;  %v220_v4 = vadd.f32 %v219_v50, %v218_v25  ;;  %v330_v14 = vrot.slane %v329_v61, 2 }
 0x20a   :  { %v262_v52 = vsel %vm182_vm4, %v254_v48, 0.0  ;;  %v241_v27 = vrot.slane %v240_v12, 2  ;;  %v196_v9 = vadd.f32 %v195_v51, %v194_v34 }
 0x20b   :  { %v263_v63 = vrot.slane %v262_v52, 4  ;;  %v366_v30 = vsel %vm365_vm5, %v189_v59, %v213_v46 }
 0x20c   :  { %v271_v60 = vpop.permute.xlu1 %270  ;;  %v242_v44 = vadd.f32 %v241_v27, %v240_v12  ;;  %v260_v27 = vrot.slane %v259_v11, 1 }
 0x20d   :  { %v277_v1 = vmul.f32 %v271_v60, %v1523_v6  ;;  %v264_v15 = vadd.f32 %v263_v63, %v262_v52  ;;  %v235_v52 = vadd.f32 %v234_v35, %v233_v18  ;;  %v290_v60 = vadd.f32 %v289_v42, %v288_v26 }
 0x20e   :  { %v243_v62 = vrot.slane %v242_v44, 1  ;;  %v361_v63 = vrot.slane %v360_v47, 2  ;;  %v367_v26 = vsel %vm365_vm5, %v196_v9, %v220_v4  ;;  %v261_v43 = vadd.f32 %v260_v27, %v259_v11  ;;  %v425_v9 = vpop.permute.xlu0 %424 }
 0x20f   :  { %v279_v7 = vsel %vm182_vm4, %v277_v1, 0.0  ;;  %v265_v31 = vrot.slane %v264_v15, 2  ;;  %v236_v5 = vrot.slane %v235_v52, 1  ;;  %v291_v18 = vrot.slane %v290_v60, 1 }
 0x210   :  { %v280_v19 = vrot.slane %v279_v7, 4 }
 0x211   :  { %v295_v16 = vpop.permute.xlu1 %294  ;;  %v266_v48 = vadd.f32 %v265_v31, %v264_v15  ;;  %v244_v15 = vadd.f32 %v243_v62, %v242_v44  ;;  %v237_v22 = vadd.f32 %v236_v5, %v235_v52  ;;  %v331_v31 = vadd.f32 %v330_v14, %v329_v61 }
 0x212   :  { %v301_v20 = vmul.f32 %v295_v16, %v1523_v6  ;;  %v281_v36 = vadd.f32 %v280_v19, %v279_v7  ;;  %v362_v19 = vadd.f32 %v361_v63, %v360_v47  ;;  %v292_v38 = vadd.f32 %v291_v18, %v290_v60 }
 0x213   :  { %v267_v1 = vrot.slane %v266_v48, 1  ;;  %v369_v39 = vsel %vm368_vm6, %v366_v30, %v237_v22  ;;  %v332_v46 = vrot.slane %v331_v31, 1 }
 0x214   :  { %v303_v28 = vsel %vm182_vm4, %v301_v20, 0.0  ;;  %v282_v53 = vrot.slane %v281_v36, 2  ;;  %v363_v34 = vrot.slane %v362_v19, 1  ;;  %v372_v52 = vsel %vm371_vm7, %v369_v39, %v261_v43 }
 0x215   :  { %v304_v32 = vrot.slane %v303_v28, 4  ;;  %v299_v33 = vpop.permute.xlu1 %298  ;;  %v268_v20 = vadd.f32 %v267_v1, %v266_v48  ;;  %v333_v60 = vadd.f32 %v332_v46, %v331_v31  ;;  %v1656_v31 = vsub.s32 4, %v1593_v41 }
 0x216   :  { %v302_v37 = vmul.f32 %v299_v33, %v1528_v10  ;;  %v283_v7 = vadd.f32 %v282_v53, %v281_v36  ;;  %v364_v51 = vadd.f32 %v363_v34, %v362_v19 }
 0x217   :  { %v305_v40 = vadd.f32 %v304_v32, %v303_v28 }
 0x218   :  { %v310_v45 = vsel %vm182_vm4, %v302_v37, 0.0  ;;  %v284_v23 = vrot.slane %v283_v7, 1 }
 0x219   :  { %v311_v49 = vrot.slane %v310_v45, 4  ;;  %v306_v56 = vrot.slane %v305_v40, 2 }
 0x21a   :  { %v323_v54 = vpop.permute.xlu1 %322 }
 0x21b   :  { %v312_v57 = vadd.f32 %v311_v49, %v310_v45  ;;  %v326_v58 = vmul.f32 %v323_v54, %v1528_v10  ;;  %v307_v12 = vadd.f32 %v306_v56, %v305_v40  ;;  %v285_v40 = vadd.f32 %v284_v23, %v283_v7 }
 0x21c   :  { %v1607_v49 = vsub.s32 0, %v1593_v41  ;;  %v1630_v7 = vsub.s32 2, %v1593_v41 }
 0x21d   :  { %v313_v2 = vrot.slane %v312_v57, 2  ;;  %v334_v3 = vsel %vm182_vm4, %v326_v58, 0.0  ;;  %v308_v28 = vrot.slane %v307_v12, 1  ;;  %v375_v55 = vsel %vm374_vm8, %v372_v52, %v285_v40 }
 0x21e   :  { %v335_v8 = vrot.slane %v334_v3, 4 }
 0x21f   :  { %v314_v13 = vadd.f32 %v313_v2, %v312_v57  ;;  %v343_v10 = vpop.permute.xlu1 %342  ;;  %v309_v44 = vadd.f32 %v308_v28, %v307_v12 }
 0x220   :  { %v336_v16 = vadd.f32 %v335_v8, %v334_v3  ;;  %v349_v17 = vmul.f32 %v343_v10, %v1523_v6  ;;  %v370_v6 = vsel %vm368_vm6, %v367_v26, %v244_v15  ;;  %v1621_v3 = vsub.s32 1, %v1593_v41 }
 0x221   :  { %v315_v21 = vrot.slane %v314_v13, 1  ;;  %v373_v35 = vsel %vm371_vm7, %v370_v6, %v268_v20  ;;  %v378_v57 = vsel %vm377_vm9, %v375_v55, %v309_v44 }
 0x222   :  { %v337_v24 = vrot.slane %v336_v16, 2  ;;  %v351_v25 = vsel %vm182_vm4, %v349_v17, 0.0  ;;  %v376_v47 = vsel %vm374_vm8, %v373_v35, %v292_v38  ;;  %v381_v1 = vsel %vm380_vm10, %v378_v57, %v333_v60  ;;  %v1321_v60 = vld [vmem:[#allocation7] sm:$0xff]  }
 0x223   :  { %v352_v29 = vrot.slane %v351_v25, 4  ;;  %v316_v36 = vadd.f32 %v315_v21, %v314_v13  ;;  %v1641_v17 = vsub.s32 3, %v1593_v41  ;;  %v457_v21 = vpop.permute.xlu0 %456 }
 0x224   :  { %v338_v32 = vadd.f32 %v337_v24, %v336_v16  ;;  %v390_v33 = vpop.permute.xlu1 %389 }
 0x225   :  { %v353_v37 = vadd.f32 %v352_v29, %v351_v25  ;;  %v379_v53 = vsel %vm377_vm9, %v376_v47, %v316_v36 }
 0x226   :  { %v339_v42 = vrot.slane %v338_v32, 1 }
 0x227   :  { %v354_v45 = vrot.slane %v353_v37, 2 }
 0x228   :  { %v340_v48 = vadd.f32 %v339_v42, %v338_v32  ;;  %v395_v50 = vpop.permute.xlu1 %394  ;;  %v1669_v42 = vsub.s32 6, %v1593_v41 }
 0x229   :  { %v355_v54 = vadd.f32 %v354_v45, %v353_v37  ;;  %v1664_v37 = vsub.s32 5, %v1593_v41  ;;  %v1673_v45 = vsub.s32 7, %v1593_v41 }
 0x22a   :  { %v382_v56 = vsel %vm380_vm10, %v379_v53, %v340_v48 }
 0x22b   :  { %v1615_v58 = vsel %vm383_vm11, %v382_v56, %v364_v51  ;;  %v356_v59 = vrot.slane %v355_v54, 1 }
 0x22c   :  { %v404_v61 = vrot.slane %v1615_v58, %v1607_v49  ;;  %v438_v12 = vrot.slane %v1615_v58, %v1621_v3  ;;  %v466_v18 = vrot.slane %v1615_v58, %v1630_v7  ;;  %v494_v25 = vrot.slane %v1615_v58, %v1641_v17 }
 0x22d   :  { %v357_v62 = vadd.f32 %v356_v59, %v355_v54  ;;  %v429_v63 = vpop.permute.xlu1 %428  ;;  %v522_v36 = vrot.slane %v1615_v58, %v1656_v31  ;;  %v550_v40 = vrot.slane %v1615_v58, %v1664_v37  ;;  %v578_v46 = vrot.slane %v1615_v58, %v1669_v42  ;;  %v1320_v59 = vld [vmem:[#allocation7 + $0x8] sm:$0xff]  }
 0x22e   :  { %v406_v2 = vmul.f32 %v404_v61, %v395_v50  ;;  %v440_v15 = vmul.f32 %v438_v12, %v429_v63  ;;  %v468_v23 = vmul.f32 %v466_v18, %v457_v21  ;;  %v606_v50 = vrot.slane %v1615_v58, %v1673_v45  ;;  %1206 = vmatpush3.bf16.msra.mxu1 %v1320_v59  ;;  %v1184_v18 = vld [vmem:[%s1820_s2] ss:$0 sm:$0xff] }
 0x22f   :  { %v1624_v4 = vsel %vm383_vm11, %v381_v1, %v357_v62  ;;  %1207 = vmatprep.subr.bf16.mxu1 %v1437_v0  ;;  %v1459_v61 = vmov 33   ;;  %v1460_v62 = vmov 32   ;;  %v1461_v59 = vmov 42  }
 0x230   :  { %v400_v5 = vrot.slane %v1624_v4, %v1607_v49  ;;  %417 = vrot.lane.b32.xlu1 %v406_v2, %s1458_s9  ;;  %v434_v8 = vrot.slane %v1624_v4, %v1621_v3  ;;  %v462_v13 = vrot.slane %v1624_v4, %v1630_v7  ;;  %v490_v20 = vrot.slane %v1624_v4, %v1641_v17 }
 0x231   :  { %v518_v6 = vrot.slane %v1624_v4, %v1656_v31  ;;  %v546_v41 = vrot.slane %v1624_v4, %v1664_v37  ;;  %v574_v54 = vrot.slane %v1624_v4, %v1669_v42  ;;  %v602_v57 = vrot.slane %v1624_v4, %v1673_v45  ;;  %1288 = vset.pattern.permute.xlu1 %v1459_v61 }
 0x232   :  { %v405_v11 = vmul.f32 %v400_v5, %v390_v33  ;;  %v453_v10 = vpop.permute.xlu1 %452  ;;  %v439_v14 = vmul.f32 %v434_v8, %v425_v9  ;;  %1208 = vmatpush3.bf16.msra.mxu1 %v1321_v60  ;;  %1287 = vset.pattern.permute.xlu0 %v1460_v62 }
 0x233   :  { %v467_v16 = vmul.f32 %v462_v13, %v453_v10 }
 0x234   :  { %415 = vrot.lane.b32.xlu0 %v405_v11, %s1458_s9  ;;  %443 = vrot.lane.b32.xlu1 %v439_v14, %s1458_s9 }
 0x237   :  { %v481_v19 = vpop.permute.xlu1 %480 }
 0x238   :  { %445 = vrot.lane.b32.xlu0 %v440_v15, %s1458_s9  ;;  %471 = vrot.lane.b32.xlu1 %v467_v16, %s1458_s9  ;;  %v495_v22 = vmul.f32 %v490_v20, %v481_v19 }
 0x23b   :  { %v485_v24 = vpop.permute.xlu1 %484 }
 0x23c   :  { %473 = vrot.lane.b32.xlu0 %v468_v23, %s1458_s9  ;;  %499 = vrot.lane.b32.xlu1 %v495_v22, %s1458_s9  ;;  %v496_v26 = vmul.f32 %v494_v25, %v485_v24 }
 0x240   :  { %501 = vrot.lane.b32.xlu0 %v496_v26, %s1458_s9 }
 0x262   :  { %v657_v29 = vpop.permute.xlu1 %656 }
 0x263   :  { %v663_v52 = vsel %vm662_vm12, %v657_v29, 0.0 }
 0x266   :  { %v659_v27 = vpop.permute.xlu0 %658 }
 0x267   :  { %v666_v28 = vsel %vm662_vm12, %v659_v27, 0.0 }
 0x268   :  { %667 = vadd.xlane.f32.xlu0 %v666_v28 }
 0x26f   :  { %v513_v30 = vpop.permute.xlu1 %512 }
 0x270   :  { %v524_v38 = vmul.f32 %v522_v36, %v513_v30 }
 0x273   :  { %v509_v32 = vpop.permute.xlu0 %508 }
 0x274   :  { %v523_v33 = vmul.f32 %v518_v6, %v509_v32  ;;  %v537_v34 = vpop.permute.xlu1 %536 }
 0x275   :  { %v551_v53 = vmul.f32 %v546_v41, %v537_v34 }
 0x276   :  { %527 = vrot.lane.b32.xlu1 %v523_v33, %s1458_s9 }
 0x278   :  { %v541_v39 = vpop.permute.xlu0 %540 }
 0x279   :  { %v565_v35 = vpop.permute.xlu1 %564  ;;  %v552_v44 = vmul.f32 %v550_v40, %v541_v39 }
 0x27a   :  { %v579_v55 = vmul.f32 %v574_v54, %v565_v35 }
 0x27d   :  { %v569_v43 = vpop.permute.xlu1 %568  ;;  %v593_v56 = vpop.permute.xlu0 %592 }
 0x27e   :  { %529 = vrot.lane.b32.xlu0 %v524_v38, %s1458_s9  ;;  %v580_v47 = vmul.f32 %v578_v46, %v569_v43  ;;  %v607_v58 = vmul.f32 %v602_v57, %v593_v56 }
 0x282   :  { %557 = vrot.lane.b32.xlu0 %v552_v44, %s1458_s9  ;;  %v597_v48 = vpop.permute.xlu1 %596 }
 0x283   :  { %v608_v51 = vmul.f32 %v606_v50, %v597_v48 }
 0x286   :  { %585 = vrot.lane.b32.xlu0 %v580_v47, %s1458_s9 }
 0x28a   :  { %613 = vrot.lane.b32.xlu0 %v608_v51, %s1458_s9 }
 0x29a   :  { %664 = vadd.xlane.f32.xlu1 %v663_v52 }
 0x2a2   :  { %v418_v1 = vpop.permute.xlu1 %417 }
 0x2a3   :  { %v422_v24 = vadd.f32 %v1184_v18, %v418_v1 }
 0x2a6   :  { %v416_v63 = vpop.permute.xlu0 %415  ;;  %v444_v4 = vpop.permute.xlu1 %443 }
 0x2a7   :  { %v421_v19 = vadd.f32 %v1184_v18, %v416_v63 }
 0x2a9   :  { %v449_v25 = vadd.f32 %v444_v4, %v421_v19 }
 0x2aa   :  { %v446_v2 = vpop.permute.xlu0 %445  ;;  %v472_v8 = vpop.permute.xlu1 %471 }
 0x2ab   :  { %555 = vrot.lane.b32.xlu1 %v551_v53, %s1458_s9  ;;  %v450_v27 = vadd.f32 %v446_v2, %v422_v24  ;;  %v477_v28 = vadd.f32 %v472_v8, %v449_v25  ;;  %v1462_v8 = vmov 40  }
 0x2ae   :  { %v474_v5 = vpop.permute.xlu0 %473  ;;  %v500_v12 = vpop.permute.xlu1 %499 }
 0x2af   :  { %583 = vrot.lane.b32.xlu1 %v579_v55, %s1458_s9  ;;  %v478_v29 = vadd.f32 %v474_v5, %v450_v27  ;;  %v505_v32 = vadd.f32 %v500_v12, %v477_v28 }
 0x2b2   :  { %v502_v9 = vpop.permute.xlu0 %501 }
 0x2b3   :  { %611 = vrot.lane.b32.xlu1 %v607_v58, %s1458_s9  ;;  %v506_v33 = vadd.f32 %v502_v9, %v478_v29 }
 0x2e8   :  { %v528_v10 = vpop.permute.xlu1 %527 }
 0x2e9   :  { %v533_v34 = vadd.f32 %v528_v10, %v505_v32 }
 0x2f1   :  { %v668_v11 = vpop.xlane.xlu0 %667 }
 0x2f2   :  { %v1186_v13 = vmul.f32 -1.442695, %v668_v11 }
 0x2f4   :  { %1330 = vpow2.f32 %v1186_v13 }
 0x2f5   :  { %v530_v16 = vpop.permute.xlu0 %529 }
 0x2f6   :  { %v534_v35 = vadd.f32 %v530_v16, %v506_v33 }
 0x2f9   :  { %v558_v22 = vpop.permute.xlu0 %557 }
 0x2fa   :  { %v562_v36 = vadd.f32 %v558_v22, %v534_v35 }
 0x2fd   :  { %v586_v30 = vpop.permute.xlu0 %585 }
 0x2fe   :  { %v590_v43 = vadd.f32 %v586_v30, %v562_v36  ;;  %v1463_v36 = vmov 45  }
 0x301   :  { %v1331_v15 = vpop.eup %1330  ;;  %v614_v39 = vpop.permute.xlu0 %613 }
 0x302   :  { %v676_v20 = vadd.f32 1.0, %v1331_v15  ;;  %v618_v47 = vadd.f32 %v614_v39, %v590_v43  ;;  %v1465_v43 = vmov 43  }
 0x323   :  { %v665_v0 = vpop.xlane.xlu1 %664 }
 0x324   :  { %v1185_v14 = vmul.f32 -1.442695, %v665_v0 }
 0x326   :  { %1332 = vpow2.f32 %v1185_v14 }
 0x327   :  { %v556_v23 = vpop.permute.xlu1 %555  ;;  %1334 = vrcp.f32 %v676_v20 }
 0x328   :  { %v561_v38 = vadd.f32 %v556_v23, %v533_v34 }
 0x32b   :  { %v584_v6 = vpop.permute.xlu1 %583 }
 0x32c   :  { %v589_v44 = vadd.f32 %v584_v6, %v561_v38  ;;  %v1464_v38 = vmov 41  }
 0x32f   :  { %v612_v40 = vpop.permute.xlu1 %611 }
 0x330   :  { %v617_v48 = vadd.f32 %v612_v40, %v589_v44  ;;  %v1466_v44 = vmov 44  }
 0x333   :  { %v1333_v21 = vpop.eup %1332 }
 0x334   :  { %v675_v26 = vadd.f32 1.0, %v1333_v21  ;;  %v1335_v46 = vpop.eup %1334 }
 0x335   :  { %v682_v51 = vmul.f32 %v1335_v46, %v618_v47  ;;  %v1467_v46 = vmov 46   ;;  %v1468_v47 = vmov 47  }
 0x336   :  { %1336 = vrcp.f32 %v675_v26 }
 0x343   :  { %v1337_v50 = vpop.eup %1336 }
 0x344   :  { %v681_v52 = vmul.f32 %v1337_v50, %v617_v48  ;;  %v1469_v48 = vmov 35   ;;  %v1470_v50 = vmov 36  }
 0x346   :  { %v683_v41 = vpack.c.bf16 %v682_v51, %v681_v52  ;;  %v1471_v51 = vmov 38   ;;  %v1473_v52 = vmov 34  }
 0x348   :  { %1210 = vmatmul.mubr.msk.bf16.vlgmr.msra.gmra.mxu1 %vm86_vm1, %v683_v41  ;;  %v1474_v41 = vmov 37  }
 0x408   :  { %v1698_v53 = vpop.f32.mrf.mxu1 }
 0x409   :  { %1021 = vperm.xlu1 %1288, %v1698_v53   ;;  %994 = vperm.xlu0 %1287, %v1698_v53   ;;  %v745_v54 = vsel %vm744_vm13, %v1698_v53, -inf }
 0x40a   :  { %v1211_v55 = vpop.f32.mrf.mxu1  ;;  %v746_v56 = vrot.slane %v745_v54, 4 }
 0x40c   :  { %v1704_v57 = vpop.f32.mrf.mxu1  ;;  %v747_v58 = vmax.f32 %v745_v54, %v746_v56 }
 0x40d   :  { %1289 = vset.pattern.permute.xlu1 %v1460_v62  ;;  %1292 = vset.pattern.permute.xlu0 %v1461_v59  ;;  %v752_v60 = vsel %vm744_vm13, %v1704_v57, -inf }
 0x40e   :  { %999 = vperm.xlu1 %1289, %v1704_v57   ;;  %v1212_v63 = vpop.f32.mrf.mxu1  ;;  %v748_v1 = vrot.slane %v747_v58, 2  ;;  %v753_v2 = vrot.slane %v752_v60, 4 }
 0x410   :  { %v749_v4 = vmax.f32 %v747_v58, %v748_v1  ;;  %v754_v5 = vmax.f32 %v752_v60, %v753_v2 }
 0x412   :  { %1290 = vset.pattern.permute.xlu1 %v1462_v8  ;;  %v750_v9 = vrot.slane %v749_v4, 1  ;;  %v755_v11 = vrot.slane %v754_v5, 2 }
 0x414   :  { %v751_v12 = vmax.f32 %v749_v4, %v750_v9  ;;  %v756_v13 = vmax.f32 %v754_v5, %v755_v11 }
 0x416   :  { %v759_v62 = vsub.f32 %v1698_v53, %v751_v12  ;;  %v757_v10 = vrot.slane %v756_v13, 1 }
 0x418   :  { %v761_v0 = vmul.f32 1.442695, %v759_v62  ;;  %v758_v14 = vmax.f32 %v756_v13, %v757_v10 }
 0x41a   :  { %1338 = vpow2.f32 %v761_v0  ;;  %v760_v15 = vsub.f32 %v1704_v57, %v758_v14 }
 0x41c   :  { %v763_v16 = vmul.f32 1.442695, %v760_v15 }
 0x41e   :  { %1340 = vpow2.f32 %v763_v16 }
 0x427   :  { %v1339_v18 = vpop.eup %1338 }
 0x428   :  { %v765_v19 = vsel %vm744_vm13, %v1339_v18, 0.0 }
 0x429   :  { %v766_v20 = vrot.slane %v765_v19, 4 }
 0x42b   :  { %v1341_v21 = vpop.eup %1340  ;;  %v767_v22 = vadd.f32 %v766_v20, %v765_v19 }
 0x42c   :  { %v772_v23 = vsel %vm744_vm13, %v1341_v21, 0.0 }
 0x42d   :  { %v768_v24 = vrot.slane %v767_v22, 2  ;;  %v773_v25 = vrot.slane %v772_v23, 4 }
 0x42f   :  { %v769_v26 = vadd.f32 %v768_v24, %v767_v22  ;;  %v774_v27 = vadd.f32 %v773_v25, %v772_v23 }
 0x431   :  { %v770_v28 = vrot.slane %v769_v26, 1  ;;  %v775_v29 = vrot.slane %v774_v27, 2 }
 0x433   :  { %v771_v30 = vadd.f32 %v770_v28, %v769_v26  ;;  %v776_v6 = vadd.f32 %v775_v29, %v774_v27 }
 0x435   :  { %1342 = vrcp.f32 %v771_v30  ;;  %v777_v32 = vrot.slane %v776_v6, 1 }
 0x437   :  { %v778_v33 = vadd.f32 %v777_v32, %v776_v6 }
 0x439   :  { %1344 = vrcp.f32 %v778_v33 }
 0x442   :  { %v1343_v34 = vpop.eup %1342 }
 0x443   :  { %v781_v35 = vmul.f32 %v1343_v34, %v1339_v18 }
 0x445   :  { %834 = vperm.xlu0 %1292, %v781_v35   ;;  %785 = vperm.xlu1 %1290, %v781_v35  }
 0x446   :  { %v1345_v39 = vpop.eup %1344 }
 0x447   :  { %v782_v40 = vmul.f32 %v1345_v39, %v1341_v21 }
 0x449   :  { %1295 = vset.pattern.permute.xlu0 %v1463_v36  ;;  %1291 = vset.pattern.permute.xlu1 %v1464_v38 }
 0x44a   :  { %906 = vperm.xlu0 %1295, %v781_v35   ;;  %810 = vperm.xlu1 %1291, %v781_v35  }
 0x44e   :  { %1298 = vset.pattern.permute.xlu0 %v1462_v8  ;;  %1293 = vset.pattern.permute.xlu1 %v1465_v43 }
 0x44f   :  { %858 = vperm.xlu1 %1293, %v781_v35   ;;  %790 = vperm.xlu0 %1298, %v782_v40  }
 0x453   :  { %1294 = vset.pattern.permute.xlu1 %v1466_v44  ;;  %1301 = vset.pattern.permute.xlu0 %v1465_v43 }
 0x454   :  { %882 = vperm.xlu1 %1294, %v781_v35   ;;  %862 = vperm.xlu0 %1301, %v782_v40  }
 0x458   :  { %1296 = vset.pattern.permute.xlu1 %v1467_v46  ;;  %1304 = vset.pattern.permute.xlu0 %v1467_v46 }
 0x459   :  { %930 = vperm.xlu1 %1296, %v781_v35   ;;  %934 = vperm.xlu0 %1304, %v782_v40  }
 0x45d   :  { %1297 = vset.pattern.permute.xlu1 %v1468_v47  ;;  %1305 = vset.pattern.permute.xlu0 %v1459_v61  ;;  %v1472_v61 = vmov 39  }
 0x45e   :  { %954 = vperm.xlu1 %1297, %v781_v35   ;;  %1025 = vperm.xlu0 %1305, %v1704_v57  }
 0x462   :  { %1299 = vset.pattern.permute.xlu1 %v1464_v38  ;;  %1308 = vset.pattern.permute.xlu0 %v1469_v48 }
 0x463   :  { %814 = vperm.xlu1 %1299, %v782_v40   ;;  %1061 = vperm.xlu0 %1308, %v1698_v53  }
 0x467   :  { %1300 = vset.pattern.permute.xlu1 %v1461_v59  ;;  %1311 = vset.pattern.permute.xlu0 %v1470_v50 }
 0x468   :  { %838 = vperm.xlu1 %1300, %v782_v40   ;;  %1085 = vperm.xlu0 %1311, %v1704_v57  }
 0x46c   :  { %1302 = vset.pattern.permute.xlu1 %v1466_v44  ;;  %1313 = vset.pattern.permute.xlu0 %v1471_v51 }
 0x46d   :  { %886 = vperm.xlu1 %1302, %v782_v40   ;;  %1121 = vperm.xlu0 %1313, %v1698_v53  }
 0x471   :  { %1303 = vset.pattern.permute.xlu1 %v1463_v36  ;;  %1316 = vset.pattern.permute.xlu0 %v1472_v61 }
 0x472   :  { %910 = vperm.xlu1 %1303, %v782_v40   ;;  %1145 = vperm.xlu0 %1316, %v1704_v57  }
 0x476   :  { %1306 = vset.pattern.permute.xlu1 %v1468_v47 }
 0x477   :  { %958 = vperm.xlu1 %1306, %v782_v40  }
 0x47b   :  { %1307 = vset.pattern.permute.xlu1 %v1473_v52 }
 0x47c   :  { %1041 = vperm.xlu1 %1307, %v1698_v53  }
 0x480   :  { %1045 = vperm.xlu1 %1307, %v1704_v57  }
 0x484   :  { %1309 = vset.pattern.permute.xlu1 %v1469_v48  ;;  %v1729_v54 = vpop.permute.xlu1 %1021  ;;  %v1733_v58 = vpop.permute.xlu0 %994 }
 0x485   :  { %1065 = vperm.xlu1 %1309, %v1704_v57  }
 0x489   :  { %1310 = vset.pattern.permute.xlu1 %v1470_v50  ;;  %v1731_v55 = vpop.permute.xlu1 %999 }
 0x48a   :  { %1081 = vperm.xlu1 %1310, %v1698_v53  }
 0x48e   :  { %1312 = vset.pattern.permute.xlu1 %v1474_v41 }
 0x48f   :  { %1101 = vperm.xlu1 %1312, %v1698_v53  }
 0x493   :  { %1105 = vperm.xlu1 %1312, %v1704_v57  }
 0x497   :  { %1314 = vset.pattern.permute.xlu1 %v1471_v51 }
 0x498   :  { %1125 = vperm.xlu1 %1314, %v1704_v57  }
 0x49c   :  { %1315 = vset.pattern.permute.xlu1 %v1472_v61 }
 0x49d   :  { %1141 = vperm.xlu1 %1315, %v1698_v53  }
 0x4c0   :  { %v786_v56 = vpop.permute.xlu1 %785  ;;  %v835_v60 = vpop.permute.xlu0 %834 }
 0x4c1   :  { %v841_v1 = vmul.f32 %v835_v60, %v1698_v53  ;;  %v793_v8 = vmul.f32 %v786_v56, %v1698_v53 }
 0x4c3   :  { %v843_v9 = vsel %vm86_vm1, %v841_v1, 0.0  ;;  %v795_v13 = vsel %vm86_vm1, %v793_v8, 0.0 }
 0x4c4   :  { %v844_v10 = vrot.slane %v843_v9, 4  ;;  %v796_v16 = vrot.slane %v795_v13, 4 }
 0x4c5   :  { %v811_v59 = vpop.permute.xlu1 %810  ;;  %v907_v2 = vpop.permute.xlu0 %906 }
 0x4c6   :  { %v817_v5 = vmul.f32 %v811_v59, %v1698_v53  ;;  %v845_v19 = vadd.f32 %v844_v10, %v843_v9  ;;  %v913_v22 = vmul.f32 %v907_v2, %v1698_v53  ;;  %v797_v26 = vadd.f32 %v796_v16, %v795_v13 }
 0x4c8   :  { %v819_v11 = vsel %vm86_vm1, %v817_v5, 0.0  ;;  %v846_v30 = vrot.slane %v845_v19, 2  ;;  %v915_v34 = vsel %vm86_vm1, %v913_v22, 0.0  ;;  %v798_v39 = vrot.slane %v797_v26, 2 }
 0x4c9   :  { %v820_v14 = vrot.slane %v819_v11, 4  ;;  %v916_v48 = vrot.slane %v915_v34, 4 }
 0x4ca   :  { %v859_v63 = vpop.permute.xlu1 %858  ;;  %v791_v62 = vpop.permute.xlu0 %790  ;;  %v847_v61 = vadd.f32 %v846_v30, %v845_v19 }
 0x4cb   :  { %v865_v0 = vmul.f32 %v859_v63, %v1698_v53  ;;  %v794_v21 = vmul.f32 %v791_v62, %v1704_v57  ;;  %v821_v23 = vadd.f32 %v820_v14, %v819_v11  ;;  %v917_v9 = vadd.f32 %v916_v48, %v915_v34 }
 0x4cc   :  { %v848_v62 = vrot.slane %v847_v61, 1 }
 0x4cd   :  { %v867_v20 = vsel %vm86_vm1, %v865_v0, 0.0  ;;  %v802_v6 = vsel %vm86_vm1, %v794_v21, 0.0  ;;  %v822_v35 = vrot.slane %v821_v23, 2 }
 0x4ce   :  { %v868_v28 = vrot.slane %v867_v20, 4  ;;  %v803_v44 = vrot.slane %v802_v6, 4 }
 0x4cf   :  { %v883_v4 = vpop.permute.xlu1 %882  ;;  %v863_v25 = vpop.permute.xlu0 %862  ;;  %v823_v52 = vadd.f32 %v822_v35, %v821_v23 }
 0x4d0   :  { %v889_v15 = vmul.f32 %v883_v4, %v1698_v53  ;;  %v866_v36 = vmul.f32 %v863_v25, %v1704_v57  ;;  %v869_v43 = vadd.f32 %v868_v28, %v867_v20  ;;  %v799_v4 = vadd.f32 %v798_v39, %v797_v26 }
 0x4d1   :  { %v804_v8 = vadd.f32 %v803_v44, %v802_v6  ;;  %v824_v14 = vrot.slane %v823_v52, 1  ;;  %v918_v25 = vrot.slane %v917_v9, 2 }
 0x4d2   :  { %v891_v24 = vsel %vm86_vm1, %v889_v15, 0.0  ;;  %v874_v41 = vsel %vm86_vm1, %v866_v36, 0.0  ;;  %v870_v5 = vrot.slane %v869_v43, 2 }
 0x4d3   :  { %v892_v32 = vrot.slane %v891_v24, 4  ;;  %v805_v21 = vrot.slane %v804_v8, 2  ;;  %v825_v36 = vadd.f32 %v824_v14, %v823_v52 }
 0x4d4   :  { %v931_v12 = vpop.permute.xlu1 %930  ;;  %v935_v46 = vpop.permute.xlu0 %934  ;;  %v871_v20 = vadd.f32 %v870_v5, %v869_v43 }
 0x4d5   :  { %v937_v27 = vmul.f32 %v931_v12, %v1698_v53  ;;  %v893_v50 = vadd.f32 %v892_v32, %v891_v24  ;;  %v938_v60 = vmul.f32 %v935_v46, %v1704_v57  ;;  %v875_v12 = vrot.slane %v874_v41, 4 }
 0x4d6   :  { %v800_v24 = vrot.slane %v799_v4, 1  ;;  %v849_v32 = vadd.f32 %v848_v62, %v847_v61  ;;  %v806_v39 = vadd.f32 %v805_v21, %v804_v8 }
 0x4d7   :  { %v939_v40 = vsel %vm86_vm1, %v937_v27, 0.0  ;;  %v894_v11 = vrot.slane %v893_v50, 2  ;;  %v946_v15 = vsel %vm86_vm1, %v938_v60, 0.0  ;;  %v876_v27 = vadd.f32 %v875_v12, %v874_v41 }
 0x4d8   :  { %v940_v56 = vrot.slane %v939_v40, 4  ;;  %v801_v48 = vadd.f32 %v800_v24, %v799_v4 }
 0x4d9   :  { %v955_v18 = vpop.permute.xlu1 %954  ;;  %v895_v26 = vadd.f32 %v894_v11, %v893_v50  ;;  %v877_v46 = vrot.slane %v876_v27, 2  ;;  %v919_v50 = vadd.f32 %v918_v25, %v917_v9 }
 0x4da   :  { %v961_v29 = vmul.f32 %v955_v18, %v1698_v53  ;;  %v941_v10 = vadd.f32 %v940_v56, %v939_v40  ;;  %v977_v52 = vsel %vm365_vm5, %v801_v48, %v825_v36 }
 0x4db   :  { %v896_v44 = vrot.slane %v895_v26, 1  ;;  %v878_v11 = vadd.f32 %v877_v46, %v876_v27  ;;  %v979_v14 = vsel %vm368_vm6, %v977_v52, %v849_v32 }
 0x4dc   :  { %v963_v53 = vsel %vm86_vm1, %v961_v29, 0.0  ;;  %v942_v28 = vrot.slane %v941_v10, 2  ;;  %v947_v29 = vrot.slane %v946_v15, 4 }
 0x4dd   :  { %v964_v63 = vrot.slane %v963_v53, 4  ;;  %v897_v8 = vadd.f32 %v896_v44, %v895_v26  ;;  %v879_v24 = vrot.slane %v878_v11, 1 }
 0x4de   :  { %v815_v33 = vpop.permute.xlu1 %814  ;;  %v948_v41 = vadd.f32 %v947_v29, %v946_v15 }
 0x4df   :  { %v818_v38 = vmul.f32 %v815_v33, %v1704_v57  ;;  %v965_v16 = vadd.f32 %v964_v63, %v963_v53  ;;  %v807_v63 = vrot.slane %v806_v39, 1 }
 0x4e0   :  { %v949_v4 = vrot.slane %v948_v41, 2 }
 0x4e1   :  { %v826_v47 = vsel %vm86_vm1, %v818_v38, 0.0  ;;  %v966_v33 = vrot.slane %v965_v16, 2  ;;  %v872_v38 = vrot.slane %v871_v20, 1 }
 0x4e2   :  { %v827_v51 = vrot.slane %v826_v47, 4 }
 0x4e3   :  { %v839_v59 = vpop.permute.xlu1 %838  ;;  %v967_v56 = vadd.f32 %v966_v33, %v965_v16  ;;  %v873_v5 = vadd.f32 %v872_v38, %v871_v20  ;;  %v880_v38 = vadd.f32 %v879_v24, %v878_v11 }
 0x4e4   :  { %v828_v1 = vadd.f32 %v827_v51, %v826_v47  ;;  %v842_v2 = vmul.f32 %v839_v59, %v1704_v57  ;;  %v943_v51 = vadd.f32 %v942_v28, %v941_v10  ;;  %v950_v28 = vadd.f32 %v949_v4, %v948_v41 }
 0x4e5   :  { %v968_v15 = vrot.slane %v967_v56, 1  ;;  %v981_v20 = vsel %vm371_vm7, %v979_v14, %v873_v5 }
 0x4e6   :  { %v850_v13 = vsel %vm86_vm1, %v842_v2, 0.0  ;;  %v829_v18 = vrot.slane %v828_v1, 2  ;;  %v944_v62 = vrot.slane %v943_v51, 1  ;;  %v983_v26 = vsel %vm374_vm8, %v981_v20, %v897_v8 }
 0x4e7   :  { %v851_v0 = vrot.slane %v850_v13, 4  ;;  %v951_v44 = vrot.slane %v950_v28, 1 }
 0x4e8   :  { %v887_v19 = vpop.permute.xlu1 %886  ;;  %v830_v34 = vadd.f32 %v829_v18, %v828_v1  ;;  %v945_v27 = vadd.f32 %v944_v62, %v943_v51  ;;  %v1026_v51 = vpop.permute.xlu0 %1025 }
 0x4e9   :  { %v852_v22 = vadd.f32 %v851_v0, %v850_v13  ;;  %v890_v23 = vmul.f32 %v887_v19, %v1704_v57  ;;  %v920_v0 = vrot.slane %v919_v50, 1 }
 0x4ea   :  { %v831_v59 = vrot.slane %v830_v34, 1 }
 0x4eb   :  { %v853_v30 = vrot.slane %v852_v22, 2  ;;  %v898_v6 = vsel %vm86_vm1, %v890_v23, 0.0  ;;  %v808_v23 = vadd.f32 %v807_v63, %v806_v39 }
 0x4ec   :  { %v899_v35 = vrot.slane %v898_v6, 4  ;;  %v832_v16 = vadd.f32 %v831_v59, %v830_v34  ;;  %v1062_v5 = vpop.permute.xlu0 %1061 }
 0x4ed   :  { %v854_v40 = vadd.f32 %v853_v30, %v852_v22  ;;  %v911_v43 = vpop.permute.xlu1 %910  ;;  %v921_v30 = vadd.f32 %v920_v0, %v919_v50 }
 0x4ee   :  { %v900_v53 = vadd.f32 %v899_v35, %v898_v6  ;;  %v914_v47 = vmul.f32 %v911_v43, %v1704_v57  ;;  %v969_v6 = vadd.f32 %v968_v15, %v967_v56  ;;  %v978_v32 = vsel %vm365_vm5, %v808_v23, %v832_v16 }
 0x4ef   :  { %v855_v1 = vrot.slane %v854_v40, 1  ;;  %v985_v39 = vsel %vm377_vm9, %v983_v26, %v921_v30 }
 0x4f0   :  { %v901_v61 = vrot.slane %v900_v53, 2  ;;  %v922_v60 = vsel %vm86_vm1, %v914_v47, 0.0  ;;  %v987_v43 = vsel %vm380_vm10, %v985_v39, %v945_v27  ;;  %v1086_v16 = vpop.permute.xlu0 %1085 }
 0x4f1   :  { %v923_v2 = vrot.slane %v922_v60, 4  ;;  %v856_v18 = vadd.f32 %v855_v1, %v854_v40  ;;  %v1776_v47 = vsel %vm383_vm11, %v987_v43, %v969_v6 }
 0x4f2   :  { %v902_v12 = vadd.f32 %v901_v61, %v900_v53  ;;  %v959_v13 = vpop.permute.xlu1 %958  ;;  %v952_v61 = vadd.f32 %v951_v44, %v950_v28  ;;  %v1031_v62 = vrot.slane %v1776_v47, %v1621_v3  ;;  %v1051_v0 = vrot.slane %v1776_v47, %v1630_v7 }
 0x4f3   :  { %v924_v9 = vadd.f32 %v923_v2, %v922_v60  ;;  %v962_v10 = vmul.f32 %v959_v13, %v1704_v57  ;;  %v980_v34 = vsel %vm368_vm6, %v978_v32, %v856_v18  ;;  %v1005_v60 = vrot.slane %v1776_v47, %v1607_v49  ;;  %v1190_v13 = vld [vmem:[%s1822_s4] ss:$0 sm:$0xff]  ;;  %s1475_s4 = smov [#allocation8]  }
 0x4f4   :  { %v903_v19 = vrot.slane %v902_v12, 1  ;;  %v982_v48 = vsel %vm371_vm7, %v980_v34, %v880_v38  ;;  %v1036_v18 = vmul.f32 %v1031_v62, %v1729_v54  ;;  %v1071_v20 = vrot.slane %v1776_v47, %v1641_v17  ;;  %v1122_v30 = vpop.permute.xlu0 %1121  ;;  %s1167_s13 = sshll.u32 %s1475_s4, 4  ;;  %s1168_s13 = int_to_ptr.vmem [resolvable:$true] %s1167_s13 }
 0x4f5   :  { %v925_v21 = vrot.slane %v924_v9, 2  ;;  %v970_v22 = vsel %vm86_vm1, %v962_v10, 0.0  ;;  %v1010_v8 = vmul.f32 %v1005_v60, %v1733_v58  ;;  %v1091_v27 = vrot.slane %v1776_v47, %v1656_v31  ;;  %s1406_s14 = scalar_lea.vmem %s1168_s13, 256  ;;  %p1411_p2 = scmp.lt.s32.totalorder %s1168_s13, %s1168_s13 }
 0x4f6   :  { %v971_v25 = vrot.slane %v970_v22, 4  ;;  %v904_v35 = vadd.f32 %v903_v19, %v902_v12  ;;  %v1111_v32 = vrot.slane %v1776_v47, %v1664_v37  ;;  %p1407_p1 = scmp.ne.s32.totalorder %s1168_s13, %s1406_s14  ;;  %p1412_p3 = scmp.lt.s32.totalorder %s1406_s14, %s1406_s14 }
 0x4f7   :  { %v926_v57 = vadd.f32 %v925_v21, %v924_v9  ;;  %v1042_v29 = vpop.permute.xlu1 %1041  ;;  %v1018_v58 = vadd.f32 %v1190_v13, %v1010_v8 }
 0x4f8   :  { %v972_v33 = vadd.f32 %v971_v25, %v970_v22  ;;  %v984_v41 = vsel %vm374_vm8, %v982_v48, %v904_v35  ;;  %v1056_v19 = vmul.f32 %v1051_v0, %v1042_v29  ;;  %v1076_v29 = vmul.f32 %v1071_v20, %v1062_v5  ;;  %p1413_p4 = por %p1412_p3, %p1411_p2 }
 0x4f9   :  { %v927_v36 = vrot.slane %v926_v57, 1  ;;  %v1038_v23 = vadd.f32 %v1036_v18, %v1018_v58 }
 0x4fa   :  { %v973_v40 = vrot.slane %v972_v33, 2  ;;  %p1414_p5 = pnand %p1413_p4, %p1407_p1 }
 0x4fb   :  { %v928_v46 = vadd.f32 %v927_v36, %v926_v57  ;;  %v1046_v53 = vpop.permute.xlu1 %1045  ;;  %v1058_v25 = vadd.f32 %v1056_v19, %v1038_v23 }
 0x4fc   :  { %v974_v50 = vadd.f32 %v973_v40, %v972_v33 }
 0x4fd   :  { %v986_v56 = vsel %vm377_vm9, %v984_v41, %v928_v46  ;;  %v1078_v34 = vadd.f32 %v1076_v29, %v1058_v25  ;;  %v1146_v46 = vpop.permute.xlu0 %1145 }
 0x4fe   :  { %v975_v59 = vrot.slane %v974_v50, 1  ;;  %v988_v1 = vsel %vm380_vm10, %v986_v56, %v952_v61 }
 0x500   :  { %v976_v52 = vadd.f32 %v975_v59, %v974_v50  ;;  %v1066_v63 = vpop.permute.xlu1 %1065 }
 0x502   :  { %v990_v2 = vsel %vm383_vm11, %v988_v1, %v976_v52 }
 0x503   :  { %v1009_v11 = vrot.slane %v990_v2, %v1607_v49  ;;  %v1035_v12 = vrot.slane %v990_v2, %v1621_v3  ;;  %v1055_v9 = vrot.slane %v990_v2, %v1630_v7  ;;  %v1075_v15 = vrot.slane %v990_v2, %v1641_v17 }
 0x504   :  { %v1115_v54 = vrot.slane %v990_v2, %v1664_v37  ;;  %v1135_v36 = vrot.slane %v990_v2, %v1669_v42  ;;  %v1155_v38 = vrot.slane %v990_v2, %v1673_v45 }
 0x505   :  { %v1011_v4 = vmul.f32 %v1009_v11, %v1731_v55  ;;  %v1082_v10 = vpop.permute.xlu1 %1081  ;;  %v1037_v49 = vmul.f32 %v1035_v12, %v1026_v51  ;;  %v1057_v22 = vmul.f32 %v1055_v9, %v1046_v53  ;;  %v1095_v55 = vrot.slane %v990_v2, %v1656_v31 }
 0x506   :  { %v1077_v7 = vmul.f32 %v1075_v15, %v1066_v63  ;;  %v1096_v6 = vmul.f32 %v1091_v27, %v1082_v10  ;;  %v1131_v31 = vrot.slane %v1776_v47, %v1669_v42  ;;  %v1157_v50 = vmul.f32 %v1155_v38, %v1146_v46 }
 0x507   :  { %v1019_v14 = vadd.f32 %v1190_v13, %v1011_v4  ;;  %v1097_v57 = vmul.f32 %v1095_v55, %v1086_v16  ;;  %v1151_v51 = vrot.slane %v1776_v47, %v1673_v45 }
 0x508   :  { %v1098_v39 = vadd.f32 %v1096_v6, %v1078_v34  ;;  %v1136_v37 = vmul.f32 %v1131_v31, %v1122_v30 }
 0x509   :  { %v1039_v21 = vadd.f32 %v1037_v49, %v1019_v14 }
 0x50a   :  { %v1102_v3 = vpop.permute.xlu1 %1101 }
 0x50b   :  { %v1059_v24 = vadd.f32 %v1057_v22, %v1039_v21  ;;  %v1116_v35 = vmul.f32 %v1111_v32, %v1102_v3 }
 0x50d   :  { %v1079_v26 = vadd.f32 %v1077_v7, %v1059_v24  ;;  %v1118_v53 = vadd.f32 %v1116_v35, %v1098_v39 }
 0x50e   :  { %v1106_v28 = vpop.permute.xlu1 %1105 }
 0x50f   :  { %v1099_v33 = vadd.f32 %v1097_v57, %v1079_v26  ;;  %v1117_v17 = vmul.f32 %v1115_v54, %v1106_v28  ;;  %v1138_v59 = vadd.f32 %v1136_v37, %v1118_v53 }
 0x511   :  { %v1119_v43 = vadd.f32 %v1117_v17, %v1099_v33 }
 0x513   :  { %v1126_v40 = vpop.permute.xlu1 %1125 }
 0x514   :  { %v1137_v44 = vmul.f32 %v1135_v36, %v1126_v40 }
 0x516   :  { %v1139_v48 = vadd.f32 %v1137_v44, %v1119_v43 }
 0x518   :  { %v1159_v41 = vadd.f32 %v1157_v50, %v1139_v48  ;;  %v1142_v56 = vpop.permute.xlu1 %1141 }
 0x519   :  { %v1156_v61 = vmul.f32 %v1151_v51, %v1142_v56 }
 0x51a   :  { %1161 = vst.msk [vmem:[#allocation8 + $0x8] sm:$0xff] %vm86_vm1, %v1159_v41 }
 0x51b   :  { %v1158_v42 = vadd.f32 %v1156_v61, %v1138_v59 }
 0x51d   :  { %1160 = vst.msk [vmem:[#allocation8] sm:$0xff] %vm86_vm1, %v1158_v42 }
 0x51e   :  { %1417 = shalt.err (!%p1414_p5)
}
 0x51f   :  { %s1476_s15 = smov 128   ;;  %s1477_s16 = smov 8  }
 0x520   :  { %1173 = dma.vmem_to_hbm [thread:$0]  %s1168_s13, 256, %s1823_s5, [#allocation4], %s1476_s15, %s1476_s15, %s1477_s16  }
 0x521   :  { %1430 = dma.done.wait [#allocation4], 256  }
 0x522   :  { %1431 = vsyncadd [#allocation4], 4294967040 }
 0x523   :  { %1177 = vsyncpa [#allocation3], 1 }
 0x524   :  { %1178 = vsyncpa [#allocation6], 1 }
 0x525   :  { %1179 = vsyncpa [#allocation4], 1 }

</bundles_post_ra>
